<compile_context>
chip_gen: v7x
topology: tpu7x:2x2x1
jax: 0.10.0
libtpu: 0.0.40
codegen_flags: <defaults>
</compile_context>

<pallas_src>
import functools

import numpy as np
import jax
import jax.numpy as jnp
from jax.experimental import pallas as pl
from jax.experimental.pallas import tpu as pltpu


def _round_up(x, m):
    return (x + m - 1) // m * m


def _device_kind():
    try:
        return jax.devices()[0].device_kind.lower()
    except Exception:
        return ""


def _vmem_cap_bytes(kind):
    # ~56 MiB on v7x (64 MiB physical VMEM), ~100 MiB on v5e/v6e (128 MiB).
    if "v7" in kind:
        return 56 * 1024 * 1024
    return 100 * 1024 * 1024


# ----------------------------------------------------------------------------
# Fused TemporalConvNet stack kernel.
# One grid step processes one batch tile; all layers run back to back with the
# activations resident in VMEM.
# ----------------------------------------------------------------------------
def make_stack_kernel(Bt, L, Cp, K, dilations, has_down_list, pad8, fuse_taps):
    n_layers = len(dilations)
    n_wrefs = sum(6 if hd else 4 for hd in has_down_list)

    def kernel(x_ref, *refs):
        w_refs = refs[:n_wrefs]
        o_ref = refs[n_wrefs]
        stage = refs[n_wrefs + 1]          # VMEM (Bt, pad8 + L, Cp) bf16

        # Zero the (8-aligned) left-context rows.  Done every grid step (one
        # cheap aligned store) rather than only at program_id==0 so the kernel
        # stays correct when the 'parallel' axis is sharded across multiple
        # TensorCores (each core has its own scratch and may never see
        # iteration 0).
        stage[:, 0:pad8, :] = jnp.zeros((Bt, pad8, Cp), jnp.bfloat16)

        x = x_ref[...]                     # (Bt, L, Cp) bf16

        def causal_conv_relu(w_ref, b_ref, d, pad):
            off0 = pad8 - pad
            if fuse_taps:
                # v6e/v7x: fuse the K taps into one MXU dot with a K*Cp
                # contraction (fills the 256-deep MXU).
                taps = [stage[:, off0 + k * d: off0 + k * d + L, :]
                        for k in range(K)]
                op = jnp.concatenate(taps, axis=-1).reshape(Bt * L, K * Cp)
                acc = jnp.dot(op, w_ref[...],
                              preferred_element_type=jnp.float32)
            else:
                # v5e: 128-deep MXU -> K shallow per-tap dots accumulated in
                # f32; avoids materializing the lane-concat of misaligned
                # slices.
                acc = None
                for k in range(K):
                    tap = stage[:, off0 + k * d: off0 + k * d + L, :]
                    part = jnp.dot(tap.reshape(Bt * L, Cp),
                                   w_ref[k * Cp:(k + 1) * Cp, :],
                                   preferred_element_type=jnp.float32)
                    acc = part if acc is None else acc + part
            return jnp.maximum(acc + b_ref[...], 0.0)      # (Bt*L, Cp) f32

        i = 0
        for li in range(n_layers):
            d = dilations[li]
            pad = (K - 1) * d
            w1, b1, w2, b2 = (w_refs[i], w_refs[i + 1],
                              w_refs[i + 2], w_refs[i + 3])
            i += 4

            # ---- conv1 (dilated causal) + relu ----------------------------
            stage[:, pad8:pad8 + L, :] = x
            h1 = causal_conv_relu(w1, b1, d, pad)

            # ---- conv2 (dilated causal) + relu ----------------------------
            stage[:, pad8:pad8 + L, :] = h1.astype(jnp.bfloat16).reshape(Bt, L, Cp)
            h2 = causal_conv_relu(w2, b2, d, pad)

            # ---- residual (+ optional 1x1 downsample conv) + relu ---------
            xf = x.reshape(Bt * L, Cp)
            if has_down_list[li]:
                wd, bd = w_refs[i], w_refs[i + 1]
                i += 2
                res = jnp.dot(xf, wd[...],
                              preferred_element_type=jnp.float32) + bd[...]
            else:
                res = xf.astype(jnp.float32)               # channels match
            x = (jnp.maximum(h2 + res, 0.0)
                 .astype(jnp.bfloat16).reshape(Bt, L, Cp))

        o_ref[...] = x                                      # (Bt, L, Cp) bf16

    return kernel


def _stack_vmem_bytes(Bt, L, Cp, K, n_layers, n_down, pad8):
    """Rough working-set estimate for the fused stack kernel."""
    io_blocks = 2 * 2 * Bt * L * Cp * 2                 # in+out, double-buffered bf16
    stage = Bt * (pad8 + L) * Cp * 2                    # bf16 staging scratch
    weights = n_layers * 2 * (K * Cp * Cp * 2 + Cp * 4)  # w1/w2 bf16 + b1/b2 f32
    weights += n_down * (Cp * Cp * 2 + Cp * 4)          # (single-buffered)
    temps = Bt * L * (K * Cp * 2 + 2 * Cp * 4)          # fused operand + f32 acc/res
    return int(1.25 * (io_blocks + stage + weights + temps))


def _choose_bt(N, L, Cp, K, n_layers, n_down, pad8, cap_bytes, want_two_iters):
    """Pick the largest batch tile with Bt*L <= ~2048 rows (fills the MXU M
    dimension and amortizes per-grid-step overhead) that also fits the VMEM
    budget.  Only force >=2 grid iterations on v7x (2 TensorCores)."""
    divisors = sorted([d for d in range(1, N + 1) if N % d == 0], reverse=True)
    for bt in divisors:
        if bt == 1:
            return 1
        if want_two_iters and N > 1 and N // bt < 2:
            continue
        if bt * L > 2048:
            continue
        if _stack_vmem_bytes(bt, L, Cp, K, n_layers, n_down, pad8) > 0.75 * cap_bytes:
            continue
        return bt
    return 1


def _resident_spec(shape):
    """BlockSpec for a grid-invariant operand (constant block index): single
    VMEM copy instead of the default double-buffering."""
    ndim = len(shape)
    return pl.BlockSpec(shape, lambda n: (0,) * ndim,
                        pipeline_mode=pl.Buffered(1))


def tcn_stack(x, blocks, has_down_list, *, K):
    """x: (N, L, Cp) bf16 -> (N, L, Cp) bf16.  Cp is a multiple of 128."""
    N, L, Cp = x.shape
    n_layers = len(blocks)
    dilations = [2 ** i for i in range(n_layers)]
    max_pad = (K - 1) * dilations[-1]
    pad8 = _round_up(max(max_pad, 1), 8)   # 8-aligned staged left context

    kind = _device_kind()
    is_v5 = "v5" in kind
    is_v7 = "v7" in kind
    fuse_taps = not is_v5                  # per-tap dots on v5e's 128-deep MXU
    vmem_cap = _vmem_cap_bytes(kind)
    n_down = sum(1 for hd in has_down_list if hd)
    Bt = _choose_bt(N, L, Cp, K, n_layers, n_down, pad8, vmem_cap,
                    want_two_iters=is_v7)

    # TODO(synk): for real-size configs on v7x (64 MiB VMEM), move the layer
    # loop onto an 'arbitrary' grid axis (one layer's weights resident at a
    # time) and tile L with a carried left-context instead of holding the
    # whole sequence per grid step.

    inputs = [x]
    in_specs = [pl.BlockSpec((Bt, L, Cp), lambda n: (n, 0, 0))]
    for li, blk in enumerate(blocks):
        inputs += [blk["w1"], blk["b1"], blk["w2"], blk["b2"]]
        in_specs += [
            _resident_spec((K * Cp, Cp)),
            _resident_spec((1, Cp)),
            _resident_spec((K * Cp, Cp)),
            _resident_spec((1, Cp)),
        ]
        if has_down_list[li]:
            inputs += [blk["wd"], blk["bd"]]
            in_specs += [
                _resident_spec((Cp, Cp)),
                _resident_spec((1, Cp)),
            ]

    kernel = make_stack_kernel(Bt, L, Cp, K, dilations, has_down_list,
                               pad8, fuse_taps)
    return pl.pallas_call(
        kernel,
        out_shape=jax.ShapeDtypeStruct((N, L, Cp), jnp.bfloat16),
        grid_spec=pltpu.PrefetchScalarGridSpec(
            num_scalar_prefetch=0,
            grid=(N // Bt,),
            in_specs=in_specs,
            out_specs=pl.BlockSpec((Bt, L, Cp), lambda n: (n, 0, 0)),
            scratch_shapes=[pltpu.VMEM((Bt, pad8 + L, Cp), jnp.bfloat16)],
        ),
        compiler_params=pltpu.CompilerParams(
            dimension_semantics=("parallel",),
            vmem_limit_bytes=vmem_cap),
    )(*inputs)


# ----------------------------------------------------------------------------
# Decoder (nn.Linear) kernel: tiled (M, C) @ (C, Vp) + b.
# Grid is (vocab tiles, row tiles): the vocab-weight block index depends only
# on the outer axis, so each (C, TN) weight tile stays resident in VMEM across
# all row tiles (HBM weight traffic ~|W| instead of (Mp/TM)*|W|).
# ----------------------------------------------------------------------------
def decoder_kernel(y_ref, w_ref, b_ref, o_ref):
    o_ref[...] = (jnp.dot(y_ref[...], w_ref[...],
                          preferred_element_type=jnp.float32) + b_ref[...])


def decode(y2d, w, b):
    """y2d: (M, C) bf16, w: (C, Vp) bf16, b: (1, Vp) f32 -> (M, Vp) f32."""
    M, C = y2d.shape
    Vp = w.shape[1]
    vmem_cap = _vmem_cap_bytes(_device_kind())

    M8 = _round_up(M, 8)
    if M8 <= 512:
        TM, Mp = M8, M8
    else:
        TM = 512
        Mp = _round_up(M, TM)
    TN = min(512, Vp)          # Vp padded to a multiple of 512 in prepare_params
    assert Vp % TN == 0
    if Mp != M:
        y2d = jnp.pad(y2d, ((0, Mp - M), (0, 0)))

    # TODO(synk): emit bf16 logits (or fuse the downstream softmax/loss) to
    # halve the logit HBM writeback if the consumer tolerates it.
    out = pl.pallas_call(
        decoder_kernel,
        out_shape=jax.ShapeDtypeStruct((Mp, Vp), jnp.float32),
        grid_spec=pltpu.PrefetchScalarGridSpec(
            num_scalar_prefetch=0,
            grid=(Vp // TN, Mp // TM),          # outer: vocab, inner: rows
            in_specs=[
                pl.BlockSpec((TM, C), lambda j, i: (i, 0)),
                pl.BlockSpec((C, TN), lambda j, i: (0, j)),   # resident per j
                pl.BlockSpec((1, TN), lambda j, i: (0, j)),
            ],
            out_specs=pl.BlockSpec((TM, TN), lambda j, i: (i, j)),
        ),
        compiler_params=pltpu.CompilerParams(
            dimension_semantics=("parallel", "arbitrary"),
            vmem_limit_bytes=vmem_cap),
    )(y2d, w, b)
    return out[:M]


# ----------------------------------------------------------------------------
# Parameter preparation: pad channels to a multiple of 128 and vocab to a
# multiple of 512, fuse the K conv taps into one (K*Cp, Cp) weight, cast
# matmul operands to bf16 (biases stay f32, added to the f32 accumulator).
# ----------------------------------------------------------------------------
def prepare_params(raw, has_down_list, K, Cp, Vp):
    def pad2(a, r, c):
        return jnp.pad(a, ((0, r - a.shape[0]), (0, c - a.shape[1])))

    p = {}
    V, _ = raw["emb"].shape
    p["emb"] = pad2(raw["emb"], V, Cp).astype(jnp.bfloat16)       # (V, Cp)

    p["blocks"] = []
    for blk, hd in zip(raw["blocks"], has_down_list):
        _, cin, ch = blk["w1"].shape
        w1 = jnp.pad(blk["w1"], ((0, 0), (0, Cp - cin), (0, Cp - ch)))
        w2 = jnp.pad(blk["w2"], ((0, 0), (0, Cp - ch), (0, Cp - ch)))
        nb = {
            "w1": w1.reshape(K * Cp, Cp).astype(jnp.bfloat16),
            "b1": pad2(blk["b1"], 1, Cp),
            "w2": w2.reshape(K * Cp, Cp).astype(jnp.bfloat16),
            "b2": pad2(blk["b2"], 1, Cp),
        }
        if hd:
            nb["wd"] = pad2(blk["wd"], Cp, Cp).astype(jnp.bfloat16)
            nb["bd"] = pad2(blk["bd"], 1, Cp)
        p["blocks"].append(nb)

    p["dec_w"] = pad2(raw["dec_w"], Cp, Vp).astype(jnp.bfloat16)
    p["dec_b"] = pad2(raw["dec_b"], 1, Vp)
    return p


# ----------------------------------------------------------------------------
# Model wrapper (glue: embedding gather + reshapes).
# ----------------------------------------------------------------------------
def tcn_forward(pparams, tokens, *, K, has_down_list, V):
    N, L = tokens.shape
    # Embedding lookup (gather) in plain JAX glue; emb dropout = identity.
    # TODO(synk): fuse the gather into the stack kernel via scalar-prefetched
    # token ids + per-row DMA to save one (N, L, Cp) HBM round trip.
    x = pparams["emb"][tokens]                            # (N, L, Cp) bf16
    y = tcn_stack(x, pparams["blocks"], has_down_list, K=K)
    Cp = y.shape[-1]
    out = decode(y.reshape(N * L, Cp), pparams["dec_w"], pparams["dec_b"])
    return out.reshape(N, L, -1)[:, :, :V]


# Pure-JAX f32 reference (PyTorch semantics) for correctness checking. -------
def _causal_conv_ref(x, w, b, d):
    K = w.shape[0]
    pad = (K - 1) * d
    L = x.shape[1]
    xpad = jnp.pad(x, ((0, 0), (pad, 0), (0, 0)))
    acc = jnp.zeros((x.shape[0], L, w.shape[-1]), jnp.float32)
    for k in range(K):
        acc = acc + jnp.einsum("nlc,cd->nld", xpad[:, k * d:k * d + L, :], w[k])
    return acc + b


def tcn_forward_ref(raw, has_down_list, tokens):
    x = raw["emb"][tokens]
    for i, blk in enumerate(raw["blocks"]):
        d = 2 ** i
        h = jnp.maximum(_causal_conv_ref(x, blk["w1"], blk["b1"], d), 0.0)
        h = jnp.maximum(_causal_conv_ref(h, blk["w2"], blk["b2"], d), 0.0)
        if has_down_list[i]:
            res = jnp.einsum("nlc,cd->nld", x, blk["wd"]) + blk["bd"]
        else:
            res = x
        x = jnp.maximum(h + res, 0.0)
    return jnp.einsum("nlc,cv->nlv", x, raw["dec_w"]) + raw["dec_b"]


# ----------------------------------------------------------------------------
if __name__ == "__main__":
    # Small, deterministic synthetic configuration (no checkpoint loading).
    V = 20                    # output_size (vocab)
    E = 32                    # input_size (embedding dim)
    num_channels = [32, 48]   # block 0: no downsample, block 1: downsample
    K = 2                     # kernel_size (module default)
    N, L = 2, 16

    key = jax.random.PRNGKey(0)
    keys = iter(jax.random.split(key, 32))

    def nrm(shape, scale=0.01):
        return (scale * jax.random.normal(next(keys), shape)).astype(jnp.float32)

    raw = {"emb": nrm((V, E)), "blocks": []}
    has_down_list = []
    cin = E
    for ch in num_channels:
        hd = cin != ch
        blk = {
            "w1": nrm((K, cin, ch)),     # torch Conv1d (out,in,K) -> (K,in,out)
            "b1": nrm((1, ch)),
            "w2": nrm((K, ch, ch)),
            "b2": nrm((1, ch)),
        }
        if hd:
            blk["wd"] = nrm((cin, ch))   # torch 1x1 Conv1d (out,in,1) -> (in,out)
            blk["bd"] = nrm((1, ch))
        raw["blocks"].append(blk)
        has_down_list.append(hd)
        cin = ch
    raw["dec_w"] = nrm((num_channels[-1], V))   # torch Linear (V,C) -> (C,V)
    raw["dec_b"] = jnp.zeros((1, V), jnp.float32)

    Cp = _round_up(max(E, *num_channels), 128)  # lane-dense channel width
    Vp = _round_up(V, 512)                      # wide lane tile for decoder
    pparams = prepare_params(raw, has_down_list, K, Cp, Vp)

    tokens = jax.random.randint(jax.random.PRNGKey(42), (N, L), 0, V,
                                dtype=jnp.int32)

    fwd = jax.jit(functools.partial(tcn_forward, K=K,
                                    has_down_list=tuple(has_down_list), V=V))
    out = jax.block_until_ready(fwd(pparams, tokens))

    ref = jax.block_until_ready(tcn_forward_ref(raw, has_down_list, tokens))
    assert out.shape == (N, L, V), out.shape
    # bf16 operands (f32 accumulation) vs the pure-f32 reference.
    np.testing.assert_allclose(np.asarray(out), np.asarray(ref),
                               rtol=2e-2, atol=2e-4)

    print("KERNEL_OK")
</pallas_src>

<mosaic_0001>
module attributes {stable_mosaic.version = 11 : i64} {
  func.func @kernel(%arg0: i32, %arg1: memref<2x16x128xbf16, #tpu.memory_space<vmem>>, %arg2: memref<256x128xbf16, #tpu.memory_space<vmem>>, %arg3: memref<1x128xf32, #tpu.memory_space<vmem>>, %arg4: memref<256x128xbf16, #tpu.memory_space<vmem>>, %arg5: memref<1x128xf32, #tpu.memory_space<vmem>>, %arg6: memref<256x128xbf16, #tpu.memory_space<vmem>>, %arg7: memref<1x128xf32, #tpu.memory_space<vmem>>, %arg8: memref<256x128xbf16, #tpu.memory_space<vmem>>, %arg9: memref<1x128xf32, #tpu.memory_space<vmem>>, %arg10: memref<128x128xbf16, #tpu.memory_space<vmem>>, %arg11: memref<1x128xf32, #tpu.memory_space<vmem>>, %arg12: memref<2x16x128xbf16, #tpu.memory_space<vmem>>, %arg13: memref<2x24x128xbf16, #tpu.memory_space<vmem>>) attributes {dimension_semantics = [#tpu.dimension_semantics<parallel>], iteration_bounds = array<i64: 1>, scalar_prefetch = 0 : i64, scratch_operands = 1 : i64, tpu.core_type = #tpu.core_type<tc>, window_params = [{transform_indices = @transform_0, window_bounds = array<i64: 2, 16, 128>}, {pipeline_mode = #tpu.pipeline_mode<synchronous>, transform_indices = @transform_1, window_bounds = array<i64: 256, 128>}, {pipeline_mode = #tpu.pipeline_mode<synchronous>, transform_indices = @transform_2, window_bounds = array<i64: 1, 128>}, {pipeline_mode = #tpu.pipeline_mode<synchronous>, transform_indices = @transform_3, window_bounds = array<i64: 256, 128>}, {pipeline_mode = #tpu.pipeline_mode<synchronous>, transform_indices = @transform_4, window_bounds = array<i64: 1, 128>}, {pipeline_mode = #tpu.pipeline_mode<synchronous>, transform_indices = @transform_5, window_bounds = array<i64: 256, 128>}, {pipeline_mode = #tpu.pipeline_mode<synchronous>, transform_indices = @transform_6, window_bounds = array<i64: 1, 128>}, {pipeline_mode = #tpu.pipeline_mode<synchronous>, transform_indices = @transform_7, window_bounds = array<i64: 256, 128>}, {pipeline_mode = #tpu.pipeline_mode<synchronous>, transform_indices = @transform_8, window_bounds = array<i64: 1, 128>}, {pipeline_mode = #tpu.pipeline_mode<synchronous>, transform_indices = @transform_9, window_bounds = array<i64: 128, 128>}, {pipeline_mode = #tpu.pipeline_mode<synchronous>, transform_indices = @transform_10, window_bounds = array<i64: 1, 128>}, {transform_indices = @transform_11, window_bounds = array<i64: 2, 16, 128>}]} {
    %cst = arith.constant 0.000000e+00 : bf16
    %0 = vector.broadcast %cst : bf16 to vector<2x8x128xbf16>
    %c0 = arith.constant 0 : index
    %c0_0 = arith.constant 0 : index
    %c0_1 = arith.constant 0 : index
    %1 = vector.load %arg13[%c0, %c0_0, %c0_1] : memref<2x24x128xbf16, #tpu.memory_space<vmem>>, vector<2x8x128xbf16>
    tpu.vector_store %arg13[%c0, %c0_0, %c0_1], %0 {strides = array<i32>} : memref<2x24x128xbf16, #tpu.memory_space<vmem>>, vector<2x8x128xbf16>,
    %c0_2 = arith.constant 0 : index
    %c0_3 = arith.constant 0 : index
    %c0_4 = arith.constant 0 : index
    %2 = vector.load %arg1[%c0_2, %c0_3, %c0_4] : memref<2x16x128xbf16, #tpu.memory_space<vmem>>, vector<2x16x128xbf16>
    %c0_5 = arith.constant 0 : index
    %c8 = arith.constant 8 : index
    %c0_6 = arith.constant 0 : index
    %3 = vector.load %arg13[%c0_5, %c8, %c0_6] : memref<2x24x128xbf16, #tpu.memory_space<vmem>>, vector<2x16x128xbf16>
    tpu.vector_store %arg13[%c0_5, %c8, %c0_6], %2 {strides = array<i32>} : memref<2x24x128xbf16, #tpu.memory_space<vmem>>, vector<2x16x128xbf16>,
    %c0_7 = arith.constant 0 : index
    %c7 = arith.constant 7 : index
    %c0_8 = arith.constant 0 : index
    %4 = vector.load %arg13[%c0_7, %c7, %c0_8] : memref<2x24x128xbf16, #tpu.memory_space<vmem>>, vector<2x16x128xbf16>
    %c0_9 = arith.constant 0 : index
    %c8_10 = arith.constant 8 : index
    %c0_11 = arith.constant 0 : index
    %5 = vector.load %arg13[%c0_9, %c8_10, %c0_11] : memref<2x24x128xbf16, #tpu.memory_space<vmem>>, vector<2x16x128xbf16>
    %6 = tpu.concatenate %4, %5 in 2 : vector<2x16x128xbf16>, vector<2x16x128xbf16> -> vector<2x16x256xbf16>
    %7 = vector.shape_cast %6 : vector<2x16x256xbf16> to vector<32x256xbf16>
    %c0_12 = arith.constant 0 : index
    %c0_13 = arith.constant 0 : index
    %8 = vector.load %arg2[%c0_12, %c0_13] : memref<256x128xbf16, #tpu.memory_space<vmem>>, vector<256x128xbf16>
    %cst_14 = arith.constant dense<0.000000e+00> : vector<32x128xf32>
    %9 = tpu.matmul %7, %8, %cst_14 {dimension_numbers = #tpu.dot_dimension_numbers<[1], [0], [0], [1], [0, 0, 1, 1], [], []>} : vector<32x256xbf16>, vector<256x128xbf16>, vector<32x128xf32> -> vector<32x128xf32>
    %c0_15 = arith.constant 0 : index
    %c0_16 = arith.constant 0 : index
    %10 = vector.load %arg3[%c0_15, %c0_16] : memref<1x128xf32, #tpu.memory_space<vmem>>, vector<1x128xf32>
    %11 = vector.broadcast %10 : vector<1x128xf32> to vector<32x128xf32>
    %12 = arith.addf %9, %11 : vector<32x128xf32>
    %cst_17 = arith.constant 0.000000e+00 : f32
    %13 = vector.broadcast %cst_17 : f32 to vector<32x128xf32>
    %14 = arith.maximumf %12, %13 : vector<32x128xf32>
    %15 = arith.truncf %14 : vector<32x128xf32> to vector<32x128xbf16>
    %16 = vector.shape_cast %15 : vector<32x128xbf16> to vector<2x16x128xbf16>
    %c0_18 = arith.constant 0 : index
    %c8_19 = arith.constant 8 : index
    %c0_20 = arith.constant 0 : index
    %17 = vector.load %arg13[%c0_18, %c8_19, %c0_20] : memref<2x24x128xbf16, #tpu.memory_space<vmem>>, vector<2x16x128xbf16>
    tpu.vector_store %arg13[%c0_18, %c8_19, %c0_20], %16 {strides = array<i32>} : memref<2x24x128xbf16, #tpu.memory_space<vmem>>, vector<2x16x128xbf16>,
    %c0_21 = arith.constant 0 : index
    %c7_22 = arith.constant 7 : index
    %c0_23 = arith.constant 0 : index
    %18 = vector.load %arg13[%c0_21, %c7_22, %c0_23] : memref<2x24x128xbf16, #tpu.memory_space<vmem>>, vector<2x16x128xbf16>
    %c0_24 = arith.constant 0 : index
    %c8_25 = arith.constant 8 : index
    %c0_26 = arith.constant 0 : index
    %19 = vector.load %arg13[%c0_24, %c8_25, %c0_26] : memref<2x24x128xbf16, #tpu.memory_space<vmem>>, vector<2x16x128xbf16>
    %20 = tpu.concatenate %18, %19 in 2 : vector<2x16x128xbf16>, vector<2x16x128xbf16> -> vector<2x16x256xbf16>
    %21 = vector.shape_cast %20 : vector<2x16x256xbf16> to vector<32x256xbf16>
    %c0_27 = arith.constant 0 : index
    %c0_28 = arith.constant 0 : index
    %22 = vector.load %arg4[%c0_27, %c0_28] : memref<256x128xbf16, #tpu.memory_space<vmem>>, vector<256x128xbf16>
    %cst_29 = arith.constant dense<0.000000e+00> : vector<32x128xf32>
    %23 = tpu.matmul %21, %22, %cst_29 {dimension_numbers = #tpu.dot_dimension_numbers<[1], [0], [0], [1], [0, 0, 1, 1], [], []>} : vector<32x256xbf16>, vector<256x128xbf16>, vector<32x128xf32> -> vector<32x128xf32>
    %c0_30 = arith.constant 0 : index
    %c0_31 = arith.constant 0 : index
    %24 = vector.load %arg5[%c0_30, %c0_31] : memref<1x128xf32, #tpu.memory_space<vmem>>, vector<1x128xf32>
    %25 = vector.broadcast %24 : vector<1x128xf32> to vector<32x128xf32>
    %26 = arith.addf %23, %25 : vector<32x128xf32>
    %cst_32 = arith.constant 0.000000e+00 : f32
    %27 = vector.broadcast %cst_32 : f32 to vector<32x128xf32>
    %28 = arith.maximumf %26, %27 : vector<32x128xf32>
    %29 = vector.shape_cast %2 : vector<2x16x128xbf16> to vector<32x128xbf16>
    %30 = arith.extf %29 : vector<32x128xbf16> to vector<32x128xf32>
    %31 = arith.addf %28, %30 : vector<32x128xf32>
    %cst_33 = arith.constant 0.000000e+00 : f32
    %32 = vector.broadcast %cst_33 : f32 to vector<32x128xf32>
    %33 = arith.maximumf %31, %32 : vector<32x128xf32>
    %34 = arith.truncf %33 : vector<32x128xf32> to vector<32x128xbf16>
    %35 = vector.shape_cast %34 : vector<32x128xbf16> to vector<2x16x128xbf16>
    %c0_34 = arith.constant 0 : index
    %c8_35 = arith.constant 8 : index
    %c0_36 = arith.constant 0 : index
    %36 = vector.load %arg13[%c0_34, %c8_35, %c0_36] : memref<2x24x128xbf16, #tpu.memory_space<vmem>>, vector<2x16x128xbf16>
    tpu.vector_store %arg13[%c0_34, %c8_35, %c0_36], %35 {strides = array<i32>} : memref<2x24x128xbf16, #tpu.memory_space<vmem>>, vector<2x16x128xbf16>,
    %c0_37 = arith.constant 0 : index
    %c6 = arith.constant 6 : index
    %c0_38 = arith.constant 0 : index
    %37 = vector.load %arg13[%c0_37, %c6, %c0_38] : memref<2x24x128xbf16, #tpu.memory_space<vmem>>, vector<2x16x128xbf16>
    %c0_39 = arith.constant 0 : index
    %c8_40 = arith.constant 8 : index
    %c0_41 = arith.constant 0 : index
    %38 = vector.load %arg13[%c0_39, %c8_40, %c0_41] : memref<2x24x128xbf16, #tpu.memory_space<vmem>>, vector<2x16x128xbf16>
    %39 = tpu.concatenate %37, %38 in 2 : vector<2x16x128xbf16>, vector<2x16x128xbf16> -> vector<2x16x256xbf16>
    %40 = vector.shape_cast %39 : vector<2x16x256xbf16> to vector<32x256xbf16>
    %c0_42 = arith.constant 0 : index
    %c0_43 = arith.constant 0 : index
    %41 = vector.load %arg6[%c0_42, %c0_43] : memref<256x128xbf16, #tpu.memory_space<vmem>>, vector<256x128xbf16>
    %cst_44 = arith.constant dense<0.000000e+00> : vector<32x128xf32>
    %42 = tpu.matmul %40, %41, %cst_44 {dimension_numbers = #tpu.dot_dimension_numbers<[1], [0], [0], [1], [0, 0, 1, 1], [], []>} : vector<32x256xbf16>, vector<256x128xbf16>, vector<32x128xf32> -> vector<32x128xf32>
    %c0_45 = arith.constant 0 : index
    %c0_46 = arith.constant 0 : index
    %43 = vector.load %arg7[%c0_45, %c0_46] : memref<1x128xf32, #tpu.memory_space<vmem>>, vector<1x128xf32>
    %44 = vector.broadcast %43 : vector<1x128xf32> to vector<32x128xf32>
    %45 = arith.addf %42, %44 : vector<32x128xf32>
    %cst_47 = arith.constant 0.000000e+00 : f32
    %46 = vector.broadcast %cst_47 : f32 to vector<32x128xf32>
    %47 = arith.maximumf %45, %46 : vector<32x128xf32>
    %48 = arith.truncf %47 : vector<32x128xf32> to vector<32x128xbf16>
    %49 = vector.shape_cast %48 : vector<32x128xbf16> to vector<2x16x128xbf16>
    %c0_48 = arith.constant 0 : index
    %c8_49 = arith.constant 8 : index
    %c0_50 = arith.constant 0 : index
    %50 = vector.load %arg13[%c0_48, %c8_49, %c0_50] : memref<2x24x128xbf16, #tpu.memory_space<vmem>>, vector<2x16x128xbf16>
    tpu.vector_store %arg13[%c0_48, %c8_49, %c0_50], %49 {strides = array<i32>} : memref<2x24x128xbf16, #tpu.memory_space<vmem>>, vector<2x16x128xbf16>,
    %c0_51 = arith.constant 0 : index
    %c6_52 = arith.constant 6 : index
    %c0_53 = arith.constant 0 : index
    %51 = vector.load %arg13[%c0_51, %c6_52, %c0_53] : memref<2x24x128xbf16, #tpu.memory_space<vmem>>, vector<2x16x128xbf16>
    %c0_54 = arith.constant 0 : index
    %c8_55 = arith.constant 8 : index
    %c0_56 = arith.constant 0 : index
    %52 = vector.load %arg13[%c0_54, %c8_55, %c0_56] : memref<2x24x128xbf16, #tpu.memory_space<vmem>>, vector<2x16x128xbf16>
    %53 = tpu.concatenate %51, %52 in 2 : vector<2x16x128xbf16>, vector<2x16x128xbf16> -> vector<2x16x256xbf16>
    %54 = vector.shape_cast %53 : vector<2x16x256xbf16> to vector<32x256xbf16>
    %c0_57 = arith.constant 0 : index
    %c0_58 = arith.constant 0 : index
    %55 = vector.load %arg8[%c0_57, %c0_58] : memref<256x128xbf16, #tpu.memory_space<vmem>>, vector<256x128xbf16>
    %cst_59 = arith.constant dense<0.000000e+00> : vector<32x128xf32>
    %56 = tpu.matmul %54, %55, %cst_59 {dimension_numbers = #tpu.dot_dimension_numbers<[1], [0], [0], [1], [0, 0, 1, 1], [], []>} : vector<32x256xbf16>, vector<256x128xbf16>, vector<32x128xf32> -> vector<32x128xf32>
    %c0_60 = arith.constant 0 : index
    %c0_61 = arith.constant 0 : index
    %57 = vector.load %arg9[%c0_60, %c0_61] : memref<1x128xf32, #tpu.memory_space<vmem>>, vector<1x128xf32>
    %58 = vector.broadcast %57 : vector<1x128xf32> to vector<32x128xf32>
    %59 = arith.addf %56, %58 : vector<32x128xf32>
    %cst_62 = arith.constant 0.000000e+00 : f32
    %60 = vector.broadcast %cst_62 : f32 to vector<32x128xf32>
    %61 = arith.maximumf %59, %60 : vector<32x128xf32>
    %62 = vector.shape_cast %35 : vector<2x16x128xbf16> to vector<32x128xbf16>
    %c0_63 = arith.constant 0 : index
    %c0_64 = arith.constant 0 : index
    %63 = vector.load %arg10[%c0_63, %c0_64] : memref<128x128xbf16, #tpu.memory_space<vmem>>, vector<128x128xbf16>
    %cst_65 = arith.constant dense<0.000000e+00> : vector<32x128xf32>
    %64 = tpu.matmul %62, %63, %cst_65 {dimension_numbers = #tpu.dot_dimension_numbers<[1], [0], [0], [1], [0, 0, 1, 1], [], []>} : vector<32x128xbf16>, vector<128x128xbf16>, vector<32x128xf32> -> vector<32x128xf32>
    %c0_66 = arith.constant 0 : index
    %c0_67 = arith.constant 0 : index
    %65 = vector.load %arg11[%c0_66, %c0_67] : memref<1x128xf32, #tpu.memory_space<vmem>>, vector<1x128xf32>
    %66 = vector.broadcast %65 : vector<1x128xf32> to vector<32x128xf32>
    %67 = arith.addf %64, %66 : vector<32x128xf32>
    %68 = arith.addf %61, %67 : vector<32x128xf32>
    %cst_68 = arith.constant 0.000000e+00 : f32
    %69 = vector.broadcast %cst_68 : f32 to vector<32x128xf32>
    %70 = arith.maximumf %68, %69 : vector<32x128xf32>
    %71 = arith.truncf %70 : vector<32x128xf32> to vector<32x128xbf16>
    %72 = vector.shape_cast %71 : vector<32x128xbf16> to vector<2x16x128xbf16>
    %c0_69 = arith.constant 0 : index
    %c0_70 = arith.constant 0 : index
    %c0_71 = arith.constant 0 : index
    %73 = vector.load %arg12[%c0_69, %c0_70, %c0_71] : memref<2x16x128xbf16, #tpu.memory_space<vmem>>, vector<2x16x128xbf16>
    tpu.vector_store %arg12[%c0_69, %c0_70, %c0_71], %72 {strides = array<i32>} : memref<2x16x128xbf16, #tpu.memory_space<vmem>>, vector<2x16x128xbf16>,
    return
  }
  func.func @transform_0(%arg0: i32) -> (i32, i32, i32) {
    %c0_i32 = arith.constant 0 : i32
    %c0_i32_0 = arith.constant 0 : i32
    %c0_i32_1 = arith.constant 0 : i32
    return %arg0, %c0_i32, %c0_i32_0 : i32, i32, i32
  }
  func.func @transform_1(%arg0: i32) -> (i32, i32) {
    %c0_i32 = arith.constant 0 : i32
    %c0_i32_0 = arith.constant 0 : i32
    %c0_i32_1 = arith.constant 0 : i32
    return %c0_i32, %c0_i32_0 : i32, i32
  }
  func.func @transform_2(%arg0: i32) -> (i32, i32) {
    %c0_i32 = arith.constant 0 : i32
    %c0_i32_0 = arith.constant 0 : i32
    %c0_i32_1 = arith.constant 0 : i32
    return %c0_i32, %c0_i32_0 : i32, i32
  }
  func.func @transform_3(%arg0: i32) -> (i32, i32) {
    %c0_i32 = arith.constant 0 : i32
    %c0_i32_0 = arith.constant 0 : i32
    %c0_i32_1 = arith.constant 0 : i32
    return %c0_i32, %c0_i32_0 : i32, i32
  }
  func.func @transform_4(%arg0: i32) -> (i32, i32) {
    %c0_i32 = arith.constant 0 : i32
    %c0_i32_0 = arith.constant 0 : i32
    %c0_i32_1 = arith.constant 0 : i32
    return %c0_i32, %c0_i32_0 : i32, i32
  }
  func.func @transform_5(%arg0: i32) -> (i32, i32) {
    %c0_i32 = arith.constant 0 : i32
    %c0_i32_0 = arith.constant 0 : i32
    %c0_i32_1 = arith.constant 0 : i32
    return %c0_i32, %c0_i32_0 : i32, i32
  }
  func.func @transform_6(%arg0: i32) -> (i32, i32) {
    %c0_i32 = arith.constant 0 : i32
    %c0_i32_0 = arith.constant 0 : i32
    %c0_i32_1 = arith.constant 0 : i32
    return %c0_i32, %c0_i32_0 : i32, i32
  }
  func.func @transform_7(%arg0: i32) -> (i32, i32) {
    %c0_i32 = arith.constant 0 : i32
    %c0_i32_0 = arith.constant 0 : i32
    %c0_i32_1 = arith.constant 0 : i32
    return %c0_i32, %c0_i32_0 : i32, i32
  }
  func.func @transform_8(%arg0: i32) -> (i32, i32) {
    %c0_i32 = arith.constant 0 : i32
    %c0_i32_0 = arith.constant 0 : i32
    %c0_i32_1 = arith.constant 0 : i32
    return %c0_i32, %c0_i32_0 : i32, i32
  }
  func.func @transform_9(%arg0: i32) -> (i32, i32) {
    %c0_i32 = arith.constant 0 : i32
    %c0_i32_0 = arith.constant 0 : i32
    %c0_i32_1 = arith.constant 0 : i32
    return %c0_i32, %c0_i32_0 : i32, i32
  }
  func.func @transform_10(%arg0: i32) -> (i32, i32) {
    %c0_i32 = arith.constant 0 : i32
    %c0_i32_0 = arith.constant 0 : i32
    %c0_i32_1 = arith.constant 0 : i32
    return %c0_i32, %c0_i32_0 : i32, i32
  }
  func.func @transform_11(%arg0: i32) -> (i32, i32, i32) {
    %c0_i32 = arith.constant 0 : i32
    %c0_i32_0 = arith.constant 0 : i32
    %c0_i32_1 = arith.constant 0 : i32
    return %arg0, %c0_i32, %c0_i32_0 : i32, i32, i32
  }
}

module attributes {stable_mosaic.version = 11 : i64} {
  func.func @decoder_kernel(%arg0: i32, %arg1: i32, %arg2: memref<32x128xbf16, #tpu.memory_space<vmem>>, %arg3: memref<128x512xbf16, #tpu.memory_space<vmem>>, %arg4: memref<1x512xf32, #tpu.memory_space<vmem>>, %arg5: memref<32x512xf32, #tpu.memory_space<vmem>>) attributes {dimension_semantics = [#tpu.dimension_semantics<parallel>, #tpu.dimension_semantics<arbitrary>], iteration_bounds = array<i64: 1, 1>, scalar_prefetch = 0 : i64, scratch_operands = 0 : i64, tpu.core_type = #tpu.core_type<tc>, window_params = [{transform_indices = @transform_0, window_bounds = array<i64: 32, 128>}, {transform_indices = @transform_1, window_bounds = array<i64: 128, 512>}, {transform_indices = @transform_2, window_bounds = array<i64: 1, 512>}, {transform_indices = @transform_3, window_bounds = array<i64: 32, 512>}]} {
    %c0 = arith.constant 0 : index
    %c0_0 = arith.constant 0 : index
    %0 = vector.load %arg2[%c0, %c0_0] : memref<32x128xbf16, #tpu.memory_space<vmem>>, vector<32x128xbf16>
    %c0_1 = arith.constant 0 : index
    %c0_2 = arith.constant 0 : index
    %1 = vector.load %arg3[%c0_1, %c0_2] : memref<128x512xbf16, #tpu.memory_space<vmem>>, vector<128x512xbf16>
    %cst = arith.constant dense<0.000000e+00> : vector<32x512xf32>
    %2 = tpu.matmul %0, %1, %cst {dimension_numbers = #tpu.dot_dimension_numbers<[1], [0], [0], [1], [0, 0, 1, 1], [], []>} : vector<32x128xbf16>, vector<128x512xbf16>, vector<32x512xf32> -> vector<32x512xf32>
    %c0_3 = arith.constant 0 : index
    %c0_4 = arith.constant 0 : index
    %3 = vector.load %arg4[%c0_3, %c0_4] : memref<1x512xf32, #tpu.memory_space<vmem>>, vector<1x512xf32>
    %4 = vector.broadcast %3 : vector<1x512xf32> to vector<32x512xf32>
    %5 = arith.addf %2, %4 : vector<32x512xf32>
    %c0_5 = arith.constant 0 : index
    %c0_6 = arith.constant 0 : index
    %6 = vector.load %arg5[%c0_5, %c0_6] : memref<32x512xf32, #tpu.memory_space<vmem>>, vector<32x512xf32>
    tpu.vector_store %arg5[%c0_5, %c0_6], %5 {strides = array<i32>} : memref<32x512xf32, #tpu.memory_space<vmem>>, vector<32x512xf32>,
    return
  }
  func.func @transform_0(%arg0: i32, %arg1: i32) -> (i32, i32) {
    %c0_i32 = arith.constant 0 : i32
    %c0_i32_0 = arith.constant 0 : i32
    return %arg1, %c0_i32 : i32, i32
  }
  func.func @transform_1(%arg0: i32, %arg1: i32) -> (i32, i32) {
    %c0_i32 = arith.constant 0 : i32
    %c0_i32_0 = arith.constant 0 : i32
    return %c0_i32, %arg0 : i32, i32
  }
  func.func @transform_2(%arg0: i32, %arg1: i32) -> (i32, i32) {
    %c0_i32 = arith.constant 0 : i32
    %c0_i32_0 = arith.constant 0 : i32
    return %c0_i32, %arg0 : i32, i32
  }
  func.func @transform_3(%arg0: i32, %arg1: i32) -> (i32, i32) {
    %c0_i32 = arith.constant 0 : i32
    return %arg1, %arg0 : i32, i32
  }
}

</mosaic_0001>

<bundles_post_ra>
// kernel: tcn_forward.3
= control target key start
LH: loop header
LB: loop body
LE: loop exit
PB: predicated region body
PF: predicated region fallthrough
CT: control target
= control target key end

     0   :  { %8 = vsyncpa [#allocation3], 0  ;;  %s697_s0 = inlined_call_operand.hbm [shape: bf16[32,128], index: 0, kind: input, shape index: {}]   ;;  %s698_s1 = inlined_call_operand.hbm [shape: bf16[128,512], index: 1, kind: input, shape index: {}]   ;;  %s699_s2 = inlined_call_operand.hbm [shape: f32[1,512], index: 2, kind: input, shape index: {}]   ;;  %s700_s3 = inlined_call_operand.hbm [shape: f32[32,512], index: 3, kind: output, shape index: {}]  }
   0x1   :  { %9 = vsyncpa [#allocation6], 0 }
   0x2   :  { %10 = vsyncpa [#allocation4], 0  ;;  %s614_s12 = smov [#allocation5]   ;;  %s520_s16 = scalar_lea.hbm %s698_s1, 4096 }
   0x3   :  { %s28_s13 = sshll.u32 %s614_s12, 4  ;;  %p521_p0 = scmp.ne.s32.totalorder %s698_s1, %s520_s16  ;;  %s29_s13 = int_to_ptr.vmem [resolvable:$true] %s28_s13 }
   0x4   :  { %p524_p1 = scmp.lt.u32.totalorder %s520_s16, %s698_s1 }
   0x6   :  { %p526_p2 = pnand %p524_p1, %p521_p0 }
   0x8   :  { %529 = shalt.err (!%p526_p2)
}
   0x9   :  { %s530_s21 = scalar_lea.vmem %s29_s13, 4096  ;;  %p535_p4 = scmp.lt.s32.totalorder %s29_s13, %s29_s13 }
   0xa   :  { %p531_p3 = scmp.ne.s32.totalorder %s29_s13, %s530_s21  ;;  %p536_p5 = scmp.lt.s32.totalorder %s530_s21, %s530_s21 }
   0xc   :  { %p537_p6 = por %p536_p5, %p535_p4 }
   0xe   :  { %p538_p7 = pnand %p537_p6, %p531_p3 }
  0x10   :  { %541 = shalt.err (!%p538_p7)
}
  0x11   :  { %s615_s22 = smov 256   ;;  %s616_s23 = smov 16  }
  0x12   :  { %34 = dma.hbm_to_vmem [thread:$0]  %s698_s1, 4096, %s29_s13, [#allocation6], %s615_s22, %s615_s22, %s616_s23  }
  0x13   :  { %s617_s26 = smov [#allocation2]   ;;  %s542_s30 = scalar_lea.hbm %s697_s0, 256 }
  0x14   :  { %s16_s27 = sshll.u32 %s617_s26, 4  ;;  %p543_p8 = scmp.ne.s32.totalorder %s697_s0, %s542_s30  ;;  %s17_s27 = int_to_ptr.vmem [resolvable:$true] %s16_s27 }
  0x15   :  { %p546_p9 = scmp.lt.u32.totalorder %s542_s30, %s697_s0 }
  0x17   :  { %p548_p10 = pnand %p546_p9, %p543_p8 }
  0x19   :  { %551 = shalt.err (!%p548_p10)
}
  0x1a   :  { %s552_s8 = scalar_lea.vmem %s17_s27, 256  ;;  %p557_p12 = scmp.lt.s32.totalorder %s17_s27, %s17_s27 }
  0x1b   :  { %p553_p11 = scmp.ne.s32.totalorder %s17_s27, %s552_s8  ;;  %p558_p13 = scmp.lt.s32.totalorder %s552_s8, %s552_s8 }
  0x1d   :  { %p559_p0 = por %p558_p13, %p557_p12 }
  0x1f   :  { %p560_p1 = pnand %p559_p0, %p553_p11 }
  0x21   :  { %563 = shalt.err (!%p560_p1)
}
  0x22   :  { %s618_s1 = smov 64   ;;  %s619_s9 = smov 4  }
  0x23   :  { %22 = dma.hbm_to_vmem [thread:$0]  %s697_s0, 256, %s17_s27, [#allocation3], %s618_s1, %s618_s1, %s619_s9  }
  0x24   :  { %s620_s12 = smov [#allocation7]   ;;  %s564_s16 = scalar_lea.hbm %s699_s2, 64 }
  0x25   :  { %s41_s13 = sshll.u32 %s620_s12, 4  ;;  %p565_p2 = scmp.ne.s32.totalorder %s699_s2, %s564_s16  ;;  %s42_s13 = int_to_ptr.vmem [resolvable:$true] %s41_s13 }
  0x26   :  { %p568_p3 = scmp.lt.u32.totalorder %s564_s16, %s699_s2 }
  0x28   :  { %p570_p4 = pnand %p568_p3, %p565_p2 }
  0x2a   :  { %573 = shalt.err (!%p570_p4)
}
  0x2b   :  { %s574_s21 = scalar_lea.vmem %s42_s13, 64  ;;  %p579_p6 = scmp.lt.s32.totalorder %s42_s13, %s42_s13 }
  0x2c   :  { %p575_p5 = scmp.ne.s32.totalorder %s42_s13, %s574_s21  ;;  %p580_p7 = scmp.lt.s32.totalorder %s574_s21, %s574_s21 }
  0x2e   :  { %p581_p8 = por %p580_p7, %p579_p6 }
  0x30   :  { %p582_p9 = pnand %p581_p8, %p575_p5 }
  0x32   :  { %585 = shalt.err (!%p582_p9)
}
  0x33   :  { %44 = dma.hbm_to_vmem [thread:$0]  %s699_s2, 64, %s42_s13, [#allocation6]  }
  0x34   :  { %608 = dma.done.wait [#allocation3], 256  }
  0x35   :  { %609 = vsyncadd [#allocation3], 4294967040 }
  0x36   :  { %610 = dma.done.wait [#allocation6], 4160  }
  0x37   :  { %611 = vsyncadd [#allocation6], 4294963136  ;;  %v621_v0 = vmov 0   ;;  %v470_v1 = vld [vmem:[#allocation5 + $0x4] ss:$16 sps:$4 sm:$0xff]   ;;  %v519_v34 = vld [vmem:[#allocation2 + $0x8] sm:$0xff]   ;;  %v93_v35 = vlaneseq }
  0x38   :  { %317 = vmatprep.mubr.bf16.mxu0 %v621_v0  ;;  %370 = vmatprep.mubr.bf16.mxu1 %v621_v0  ;;  %v472_v2 = vld [vmem:[#allocation5 + $0xc] ss:$16 sps:$4 sm:$0xff]   ;;  %v474_v3 = vld [vmem:[#allocation5] ss:$16 sps:$4 sm:$0xff]   ;;  %v475_v4 = vld [vmem:[#allocation5 + $0x8] ss:$16 sps:$4 sm:$0xff]  }
  0x39   :  { %285 = vmatprep.subr.bf16.mxu0 %v470_v1  ;;  %338 = vmatprep.subr.bf16.mxu1 %v472_v2  ;;  %v476_v5 = vld [vmem:[#allocation5 + $0x24] ss:$16 sps:$4 sm:$0xff]   ;;  %v478_v6 = vld [vmem:[#allocation5 + $0x2c] ss:$16 sps:$4 sm:$0xff]   ;;  %v480_v7 = vld [vmem:[#allocation5 + $0x20] ss:$16 sps:$4 sm:$0xff]  }
  0x3a   :  { %286 = vmatpush1.bf16.msra.mxu0 %v474_v3  ;;  %339 = vmatpush1.bf16.msra.mxu1 %v475_v4  ;;  %v481_v8 = vld [vmem:[#allocation5 + $0x28] ss:$16 sps:$4 sm:$0xff]   ;;  %v482_v9 = vld [vmem:[#allocation5 + $0x44] ss:$16 sps:$4 sm:$0xff]   ;;  %v484_v10 = vld [vmem:[#allocation5 + $0x4c] ss:$16 sps:$4 sm:$0xff]  }
  0x3b   :  { %287 = vmatprep.subr.bf16.mxu0 %v476_v5  ;;  %340 = vmatprep.subr.bf16.mxu1 %v478_v6  ;;  %v486_v11 = vld [vmem:[#allocation5 + $0x40] ss:$16 sps:$4 sm:$0xff]   ;;  %v487_v12 = vld [vmem:[#allocation5 + $0x48] ss:$16 sps:$4 sm:$0xff]   ;;  %v488_v13 = vld [vmem:[#allocation5 + $0x64] ss:$16 sps:$4 sm:$0xff]  }
  0x3c   :  { %v490_v14 = vld [vmem:[#allocation5 + $0x6c] ss:$16 sps:$4 sm:$0xff]   ;;  %v492_v15 = vld [vmem:[#allocation5 + $0x60] ss:$16 sps:$4 sm:$0xff]   ;;  %v493_v16 = vld [vmem:[#allocation5 + $0x68] ss:$16 sps:$4 sm:$0xff]  }
  0x3d   :  { %v494_v17 = vld [vmem:[#allocation5 + $0x84] ss:$16 sps:$4 sm:$0xff]   ;;  %v496_v18 = vld [vmem:[#allocation5 + $0x8c] ss:$16 sps:$4 sm:$0xff]   ;;  %v498_v19 = vld [vmem:[#allocation5 + $0x80] ss:$16 sps:$4 sm:$0xff]  }
  0x3e   :  { %288 = vmatpush1.bf16.msra.mxu0 %v480_v7  ;;  %341 = vmatpush1.bf16.msra.mxu1 %v481_v8  ;;  %v499_v20 = vld [vmem:[#allocation5 + $0x88] ss:$16 sps:$4 sm:$0xff]   ;;  %v500_v21 = vld [vmem:[#allocation5 + $0xa4] ss:$16 sps:$4 sm:$0xff]   ;;  %v502_v22 = vld [vmem:[#allocation5 + $0xac] ss:$16 sps:$4 sm:$0xff]  }
  0x3f   :  { %289 = vmatprep.subr.bf16.mxu0 %v482_v9  ;;  %342 = vmatprep.subr.bf16.mxu1 %v484_v10  ;;  %v504_v23 = vld [vmem:[#allocation5 + $0xa0] ss:$16 sps:$4 sm:$0xff]   ;;  %v505_v24 = vld [vmem:[#allocation5 + $0xa8] ss:$16 sps:$4 sm:$0xff]   ;;  %v506_v25 = vld [vmem:[#allocation5 + $0xc4] ss:$16 sps:$4 sm:$0xff]  }
  0x40   :  { %v508_v26 = vld [vmem:[#allocation5 + $0xcc] ss:$16 sps:$4 sm:$0xff]   ;;  %v510_v27 = vld [vmem:[#allocation5 + $0xc0] ss:$16 sps:$4 sm:$0xff]   ;;  %v511_v28 = vld [vmem:[#allocation5 + $0xc8] ss:$16 sps:$4 sm:$0xff]  }
  0x41   :  { %v512_v29 = vld [vmem:[#allocation5 + $0xe4] ss:$16 sps:$4 sm:$0xff]   ;;  %v514_v30 = vld [vmem:[#allocation5 + $0xec] ss:$16 sps:$4 sm:$0xff]   ;;  %v516_v31 = vld [vmem:[#allocation5 + $0xe0] ss:$16 sps:$4 sm:$0xff]  }
  0x42   :  { %290 = vmatpush1.bf16.msra.mxu0 %v486_v11  ;;  %343 = vmatpush1.bf16.msra.mxu1 %v487_v12  ;;  %v517_v32 = vld [vmem:[#allocation5 + $0xe8] ss:$16 sps:$4 sm:$0xff]   ;;  %v518_v33 = vld [vmem:[#allocation2] sm:$0xff]   ;;  %v94_v36 = vshrl.u32 %v93_v35, 7  ;;  %v91_v39 = vld [vmem:[#allocation7] sm:$0xf] }
  0x43   :  { %291 = vmatprep.subr.bf16.mxu0 %v488_v13  ;;  %344 = vmatprep.subr.bf16.mxu1 %v490_v14  ;;  %s622_s2 = smov [#allocation8]  }
  0x44   :  { %v95_v37 = vsub.s32 0, %v94_v36  ;;  %v103_v38 = vsub.s32 2, %v94_v36  ;;  %v99_v40 = vsub.s32 1, %v94_v36  ;;  %v107_v41 = vsub.s32 3, %v94_v36  ;;  %s412_s23 = sshll.u32 %s622_s2, 4  ;;  %s413_s23 = int_to_ptr.vmem [resolvable:$true] %s412_s23 }
  0x45   :  { %s586_s24 = scalar_lea.vmem %s413_s23, 2048  ;;  %p591_p11 = scmp.lt.s32.totalorder %s413_s23, %s413_s23 }
  0x46   :  { %292 = vmatpush1.bf16.msra.mxu0 %v492_v15  ;;  %345 = vmatpush1.bf16.msra.mxu1 %v493_v16  ;;  %v96_v42 = vrot.slane %v91_v39, %v95_v37  ;;  %v104_v43 = vrot.slane %v91_v39, %v103_v38  ;;  %v100_v44 = vrot.slane %v91_v39, %v99_v40  ;;  %p587_p10 = scmp.ne.s32.totalorder %s413_s23, %s586_s24  ;;  %p592_p12 = scmp.lt.s32.totalorder %s586_s24, %s586_s24 }
  0x47   :  { %293 = vmatprep.subr.bf16.mxu0 %v494_v17  ;;  %346 = vmatprep.subr.bf16.mxu1 %v496_v18  ;;  %v108_v45 = vrot.slane %v91_v39, %v107_v41 }
  0x48   :  { %p593_p13 = por %p592_p12, %p591_p11 }
  0x4a   :  { %294 = vmatpush1.bf16.msra.mxu0 %v498_v19  ;;  %347 = vmatpush1.bf16.msra.mxu1 %v499_v20  ;;  %p594_p0 = pnand %p593_p13, %p587_p10 }
  0x4b   :  { %295 = vmatprep.subr.bf16.mxu0 %v500_v21  ;;  %348 = vmatprep.subr.bf16.mxu1 %v502_v22 }
  0x4e   :  { %296 = vmatpush1.bf16.msra.mxu0 %v504_v23  ;;  %349 = vmatpush1.bf16.msra.mxu1 %v505_v24 }
  0x4f   :  { %297 = vmatprep.subr.bf16.mxu0 %v506_v25  ;;  %350 = vmatprep.subr.bf16.mxu1 %v508_v26 }
  0x52   :  { %298 = vmatpush1.bf16.msra.mxu0 %v510_v27  ;;  %351 = vmatpush1.bf16.msra.mxu1 %v511_v28 }
  0x53   :  { %299 = vmatprep.subr.bf16.mxu0 %v512_v29  ;;  %352 = vmatprep.subr.bf16.mxu1 %v514_v30 }
  0x56   :  { %300 = vmatpush1.bf16.msra.mxu0 %v516_v31  ;;  %353 = vmatpush1.bf16.msra.mxu1 %v517_v32 }
  0x59   :  { %318 = vmatmul.mubr.bf16.vlgmr.msra.gmra.mrb[0].mxu0 %v518_v33  ;;  %371 = vmatmul.mubr.bf16.vlgmr.msra.gmra.mrb[0].mxu1 %v518_v33 }
  0x5a   :  { %327 = vmatprep.mubr.bf16.mxu0 %v621_v0  ;;  %380 = vmatprep.mubr.bf16.mxu1 %v621_v0 }
  0x61   :  { %328 = vmatmul.mubr.bf16.gmra.mrb[4].mxu0 %v519_v34  ;;  %381 = vmatmul.mubr.bf16.gmra.mrb[4].mxu1 %v519_v34 }
 0x12c   :  { %v319_v46 = vpop.f32.mrb[0].mxu0  ;;  %v372_v47 = vpop.f32.mrb[0].mxu1 }
 0x12d   :  { %v320_v48 = vadd.f32 %v319_v46, %v96_v42  ;;  %v373_v49 = vadd.f32 %v372_v47, %v104_v43  ;;  %v321_v50 = vpop.f32.mrb[1].mxu0  ;;  %v374_v51 = vpop.f32.mrb[1].mxu1 }
 0x12e   :  { %v322_v52 = vadd.f32 %v321_v50, %v100_v44  ;;  %v375_v53 = vadd.f32 %v374_v51, %v108_v45  ;;  %v323_v54 = vpop.f32.mrb[2].mxu0  ;;  %v376_v55 = vpop.f32.mrb[2].mxu1 }
 0x12f   :  { %391 = vst [vmem:[#allocation8] sm:$0xff] %v320_v48  ;;  %393 = vst [vmem:[#allocation8 + $0x10] sm:$0xff] %v373_v49  ;;  %v324_v56 = vadd.f32 %v323_v54, %v96_v42  ;;  %v377_v57 = vadd.f32 %v376_v55, %v104_v43  ;;  %v325_v58 = vpop.f32.mrb[3].mxu0  ;;  %v378_v59 = vpop.f32.mrb[3].mxu1 }
 0x130   :  { %392 = vst [vmem:[#allocation8 + $0x8] sm:$0xff] %v322_v52  ;;  %394 = vst [vmem:[#allocation8 + $0x18] sm:$0xff] %v375_v53  ;;  %v326_v60 = vadd.f32 %v325_v58, %v100_v44  ;;  %v379_v61 = vadd.f32 %v378_v59, %v108_v45 }
 0x131   :  { %395 = vst [vmem:[#allocation8 + $0x20] sm:$0xff] %v324_v56  ;;  %397 = vst [vmem:[#allocation8 + $0x30] sm:$0xff] %v377_v57 }
 0x132   :  { %396 = vst [vmem:[#allocation8 + $0x28] sm:$0xff] %v326_v60  ;;  %398 = vst [vmem:[#allocation8 + $0x38] sm:$0xff] %v379_v61 }
 0x134   :  { %v329_v62 = vpop.f32.mrb[4].mxu0  ;;  %v382_v63 = vpop.f32.mrb[4].mxu1 }
 0x135   :  { %v330_v0 = vadd.f32 %v329_v62, %v96_v42  ;;  %v383_v1 = vadd.f32 %v382_v63, %v104_v43  ;;  %v331_v2 = vpop.f32.mrb[5].mxu0  ;;  %v384_v3 = vpop.f32.mrb[5].mxu1 }
 0x136   :  { %v332_v4 = vadd.f32 %v331_v2, %v100_v44  ;;  %v385_v5 = vadd.f32 %v384_v3, %v108_v45  ;;  %v333_v6 = vpop.f32.mrb[6].mxu0  ;;  %v386_v7 = vpop.f32.mrb[6].mxu1 }
 0x137   :  { %399 = vst [vmem:[#allocation8 + $0x40] sm:$0xff] %v330_v0  ;;  %401 = vst [vmem:[#allocation8 + $0x50] sm:$0xff] %v383_v1  ;;  %v334_v8 = vadd.f32 %v333_v6, %v96_v42  ;;  %v387_v9 = vadd.f32 %v386_v7, %v104_v43  ;;  %v335_v10 = vpop.f32.mrb[7].mxu0  ;;  %v388_v11 = vpop.f32.mrb[7].mxu1 }
 0x138   :  { %400 = vst [vmem:[#allocation8 + $0x48] sm:$0xff] %v332_v4  ;;  %402 = vst [vmem:[#allocation8 + $0x58] sm:$0xff] %v385_v5  ;;  %v336_v12 = vadd.f32 %v335_v10, %v100_v44  ;;  %v389_v13 = vadd.f32 %v388_v11, %v108_v45 }
 0x139   :  { %403 = vst [vmem:[#allocation8 + $0x60] sm:$0xff] %v334_v8  ;;  %405 = vst [vmem:[#allocation8 + $0x70] sm:$0xff] %v387_v9 }
 0x13a   :  { %404 = vst [vmem:[#allocation8 + $0x68] sm:$0xff] %v336_v12  ;;  %406 = vst [vmem:[#allocation8 + $0x78] sm:$0xff] %v389_v13 }
 0x13b   :  { %597 = shalt.err (!%p594_p0)
}
 0x13c   :  { %s598_s27 = scalar_lea.hbm %s700_s3, 2048 }
 0x13d   :  { %p599_p1 = scmp.ne.s32.totalorder %s700_s3, %s598_s27  ;;  %p602_p2 = scmp.lt.u32.totalorder %s598_s27, %s700_s3 }
 0x13f   :  { %p604_p3 = pnand %p602_p2, %p599_p1 }
 0x141   :  { %607 = shalt.err (!%p604_p3)
}
 0x142   :  { %s623_s5 = smov 512   ;;  %s624_s6 = smov 32  }
 0x143   :  { %418 = dma.vmem_to_hbm [thread:$0]  %s413_s23, 2048, %s700_s3, [#allocation4], %s623_s5, %s623_s5, %s624_s6  }
 0x144   :  { %612 = dma.done.wait [#allocation4], 2048  }
 0x145   :  { %613 = vsyncadd [#allocation4], 4294965248 }
 0x146   :  { %422 = vsyncpa [#allocation3], 1 }
 0x147   :  { %423 = vsyncpa [#allocation6], 1 }
 0x148   :  { %424 = vsyncpa [#allocation4], 1 }

// kernel: tcn_forward.2
= control target key start
LH: loop header
LB: loop body
LE: loop exit
PB: predicated region body
PF: predicated region fallthrough
CT: control target
= control target key end

     0   :  { %16 = vsyncpa [#allocation4], 0  ;;  %s2454_s0 = inlined_call_operand.hbm [shape: bf16[2,16,128], index: 0, kind: input, shape index: {}]   ;;  %s2455_s1 = inlined_call_operand.hbm [shape: bf16[256,128], index: 1, kind: input, shape index: {}]   ;;  %s2456_s2 = inlined_call_operand.hbm [shape: f32[1,128], index: 2, kind: input, shape index: {}]   ;;  %s2457_s3 = inlined_call_operand.hbm [shape: bf16[256,128], index: 3, kind: input, shape index: {}]   ;;  %s2458_s4 = inlined_call_operand.hbm [shape: f32[1,128], index: 4, kind: input, shape index: {}]   ;;  %s2459_s5 = inlined_call_operand.hbm [shape: bf16[256,128], index: 5, kind: input, shape index: {}]   ;;  %s2460_s6 = inlined_call_operand.hbm [shape: f32[1,128], index: 6, kind: input, shape index: {}]   ;;  %s2461_s7 = inlined_call_operand.hbm [shape: bf16[256,128], index: 7, kind: input, shape index: {}]   ;;  %s2462_s8 = inlined_call_operand.hbm [shape: f32[1,128], index: 8, kind: input, shape index: {}]   ;;  %s2463_s9 = inlined_call_operand.hbm [shape: bf16[128,128], index: 9, kind: input, shape index: {}]   ;;  %s2464_s10 = inlined_call_operand.hbm [shape: f32[1,128], index: 10, kind: input, shape index: {}]   ;;  %s2465_s11 = inlined_call_operand.hbm [shape: bf16[2,16,128], index: 11, kind: output, shape index: {}]  }
   0x1   :  { %17 = vsyncpa [#allocation7], 0 }
   0x2   :  { %18 = vsyncpa [#allocation10], 0 }
   0x3   :  { %19 = vsyncpa [#allocation13], 0 }
   0x4   :  { %20 = vsyncpa [#allocation16], 0 }
   0x5   :  { %21 = vsyncpa [#allocation19], 0 }
   0x6   :  { %22 = vsyncpa [#allocation5], 0  ;;  %s2165_s17 = smov [#allocation6]   ;;  %s2166_s19 = smov [#allocation9]  }
   0x7   :  { %s40_s18 = sshll.u32 %s2165_s17, 4  ;;  %s62_s20 = sshll.u32 %s2166_s19, 4  ;;  %s41_s18 = int_to_ptr.vmem [resolvable:$true] %s40_s18  ;;  %s2240_s20 = int_to_ptr.vmem [resolvable:$true] %s62_s20 }
   0x8   :  { %s1887_s23 = scalar_lea.hbm %s2455_s1, 2048 }
   0x9   :  { %p1888_p0 = scmp.ne.s32.totalorder %s2455_s1, %s1887_s23  ;;  %p1891_p1 = scmp.lt.u32.totalorder %s1887_s23, %s2455_s1 }
   0xb   :  { %p1893_p2 = pnand %p1891_p1, %p1888_p0 }
   0xd   :  { %1896 = shalt.err (!%p1893_p2)
}
   0xe   :  { %s1897_s28 = scalar_lea.vmem %s41_s18, 2048  ;;  %p1902_p4 = scmp.lt.s32.totalorder %s41_s18, %s41_s18 }
   0xf   :  { %p1898_p3 = scmp.ne.s32.totalorder %s41_s18, %s1897_s28  ;;  %p1903_p5 = scmp.lt.s32.totalorder %s1897_s28, %s1897_s28 }
  0x11   :  { %p1904_p6 = por %p1903_p5, %p1902_p4 }
  0x13   :  { %p1905_p7 = pnand %p1904_p6, %p1898_p3 }
  0x15   :  { %1908 = shalt.err (!%p1905_p7)
}
  0x16   :  { %s2167_s29 = smov 64   ;;  %s2168_s30 = smov 4  }
  0x17   :  { %46 = dma.hbm_to_vmem [thread:$0]  %s2455_s1, 2048, %s41_s18, [#allocation7], %s2167_s29, %s2167_s29, %s2168_s30  }
  0x18   :  { %s1909_s16 = scalar_lea.hbm %s2457_s3, 2048 }
  0x19   :  { %p1910_p8 = scmp.ne.s32.totalorder %s2457_s3, %s1909_s16  ;;  %p1913_p9 = scmp.lt.u32.totalorder %s1909_s16, %s2457_s3 }
  0x1b   :  { %p1915_p10 = pnand %p1913_p9, %p1910_p8 }
  0x1d   :  { %1918 = shalt.err (!%p1915_p10)
}
  0x1e   :  { %s1919_s23 = scalar_lea.vmem %s2240_s20, 2048  ;;  %p1924_p12 = scmp.lt.s32.totalorder %s2240_s20, %s2240_s20 }
  0x1f   :  { %p1920_p11 = scmp.ne.s32.totalorder %s2240_s20, %s1919_s23  ;;  %p1925_p13 = scmp.lt.s32.totalorder %s1919_s23, %s1919_s23 }
  0x21   :  { %p1926_p0 = por %p1925_p13, %p1924_p12 }
  0x23   :  { %p1927_p1 = pnand %p1926_p0, %p1920_p11 }
  0x25   :  { %1930 = shalt.err (!%p1927_p1)
}
  0x26   :  { %68 = dma.hbm_to_vmem [thread:$0]  %s2457_s3, 2048, %s2240_s20, [#allocation10], %s2167_s29, %s2167_s29, %s2168_s30  }
  0x27   :  { %s2169_s24 = smov [#allocation12]   ;;  %s2170_s26 = smov [#allocation15]  }
  0x28   :  { %s84_s25 = sshll.u32 %s2169_s24, 4  ;;  %s106_s27 = sshll.u32 %s2170_s26, 4  ;;  %s85_s25 = int_to_ptr.vmem [resolvable:$true] %s84_s25  ;;  %s2277_s27 = int_to_ptr.vmem [resolvable:$true] %s106_s27 }
  0x29   :  { %s1931_s13 = scalar_lea.hbm %s2459_s5, 2048 }
  0x2a   :  { %p1932_p2 = scmp.ne.s32.totalorder %s2459_s5, %s1931_s13  ;;  %p1935_p3 = scmp.lt.u32.totalorder %s1931_s13, %s2459_s5 }
  0x2c   :  { %p1937_p4 = pnand %p1935_p3, %p1932_p2 }
  0x2e   :  { %1940 = shalt.err (!%p1937_p4)
}
  0x2f   :  { %s1941_s3 = scalar_lea.vmem %s85_s25, 2048  ;;  %p1946_p6 = scmp.lt.s32.totalorder %s85_s25, %s85_s25 }
  0x30   :  { %p1942_p5 = scmp.ne.s32.totalorder %s85_s25, %s1941_s3  ;;  %p1947_p7 = scmp.lt.s32.totalorder %s1941_s3, %s1941_s3 }
  0x32   :  { %p1948_p8 = por %p1947_p7, %p1946_p6 }
  0x34   :  { %p1949_p9 = pnand %p1948_p8, %p1942_p5 }
  0x36   :  { %1952 = shalt.err (!%p1949_p9)
}
  0x37   :  { %90 = dma.hbm_to_vmem [thread:$0]  %s2459_s5, 2048, %s85_s25, [#allocation13], %s2167_s29, %s2167_s29, %s2168_s30  }
  0x38   :  { %s1953_s23 = scalar_lea.hbm %s2461_s7, 2048 }
  0x39   :  { %p1954_p10 = scmp.ne.s32.totalorder %s2461_s7, %s1953_s23  ;;  %p1957_p11 = scmp.lt.u32.totalorder %s1953_s23, %s2461_s7 }
  0x3b   :  { %p1959_p12 = pnand %p1957_p11, %p1954_p10 }
  0x3d   :  { %1962 = shalt.err (!%p1959_p12)
}
  0x3e   :  { %s1963_s28 = scalar_lea.vmem %s2277_s27, 2048  ;;  %p1968_p0 = scmp.lt.s32.totalorder %s2277_s27, %s2277_s27 }
  0x3f   :  { %p1964_p13 = scmp.ne.s32.totalorder %s2277_s27, %s1963_s28  ;;  %p1969_p1 = scmp.lt.s32.totalorder %s1963_s28, %s1963_s28 }
  0x41   :  { %p1970_p2 = por %p1969_p1, %p1968_p0 }
  0x43   :  { %p1971_p3 = pnand %p1970_p2, %p1964_p13 }
  0x45   :  { %1974 = shalt.err (!%p1971_p3)
}
  0x46   :  { %112 = dma.hbm_to_vmem [thread:$0]  %s2461_s7, 2048, %s2277_s27, [#allocation16], %s2167_s29, %s2167_s29, %s2168_s30  }
  0x47   :  { %s2171_s12 = smov [#allocation18]   ;;  %s2172_s14 = smov [#allocation3]  }
  0x48   :  { %s128_s13 = sshll.u32 %s2171_s12, 4  ;;  %s28_s15 = sshll.u32 %s2172_s14, 4  ;;  %s129_s13 = int_to_ptr.vmem [resolvable:$true] %s128_s13  ;;  %s2314_s15 = int_to_ptr.vmem [resolvable:$true] %s28_s15 }
  0x49   :  { %s1975_s3 = scalar_lea.hbm %s2463_s9, 1024 }
  0x4a   :  { %p1976_p4 = scmp.ne.s32.totalorder %s2463_s9, %s1975_s3  ;;  %p1979_p5 = scmp.lt.u32.totalorder %s1975_s3, %s2463_s9 }
  0x4c   :  { %p1981_p6 = pnand %p1979_p5, %p1976_p4 }
  0x4e   :  { %1984 = shalt.err (!%p1981_p6)
}
  0x4f   :  { %s1985_s7 = scalar_lea.vmem %s129_s13, 1024  ;;  %p1990_p8 = scmp.lt.s32.totalorder %s129_s13, %s129_s13 }
  0x50   :  { %p1986_p7 = scmp.ne.s32.totalorder %s129_s13, %s1985_s7  ;;  %p1991_p9 = scmp.lt.s32.totalorder %s1985_s7, %s1985_s7 }
  0x52   :  { %p1992_p10 = por %p1991_p9, %p1990_p8 }
  0x54   :  { %p1993_p11 = pnand %p1992_p10, %p1986_p7 }
  0x56   :  { %1996 = shalt.err (!%p1993_p11)
}
  0x57   :  { %134 = dma.hbm_to_vmem [thread:$0]  %s2463_s9, 1024, %s129_s13, [#allocation19], %s2167_s29, %s2167_s29, %s2168_s30  }
  0x58   :  { %s1997_s24 = scalar_lea.hbm %s2454_s0, 256 }
  0x59   :  { %p1998_p12 = scmp.ne.s32.totalorder %s2454_s0, %s1997_s24  ;;  %p2001_p13 = scmp.lt.u32.totalorder %s1997_s24, %s2454_s0 }
  0x5b   :  { %p2003_p0 = pnand %p2001_p13, %p1998_p12 }
  0x5d   :  { %2006 = shalt.err (!%p2003_p0)
}
  0x5e   :  { %s2007_s12 = scalar_lea.vmem %s2314_s15, 256  ;;  %p2012_p2 = scmp.lt.s32.totalorder %s2314_s15, %s2314_s15 }
  0x5f   :  { %p2008_p1 = scmp.ne.s32.totalorder %s2314_s15, %s2007_s12  ;;  %p2013_p3 = scmp.lt.s32.totalorder %s2007_s12, %s2007_s12 }
  0x61   :  { %p2014_p4 = por %p2013_p3, %p2012_p2 }
  0x63   :  { %p2015_p5 = pnand %p2014_p4, %p2008_p1 }
  0x65   :  { %2018 = shalt.err (!%p2015_p5)
}
  0x66   :  { %34 = dma.hbm_to_vmem [thread:$0]  %s2454_s0, 256, %s2314_s15, [#allocation4], %s2167_s29, %s2167_s29, %s2168_s30  }
  0x67   :  { %s2173_s14 = smov [#allocation8]   ;;  %s2174_s17 = smov [#allocation11]  }
  0x68   :  { %s53_s16 = sshll.u32 %s2173_s14, 4  ;;  %s75_s3 = sshll.u32 %s2174_s17, 4  ;;  %s54_s16 = int_to_ptr.vmem [resolvable:$true] %s53_s16  ;;  %s76_s3 = int_to_ptr.vmem [resolvable:$true] %s75_s3 }
  0x69   :  { %s2019_s21 = scalar_lea.hbm %s2456_s2, 16 }
  0x6a   :  { %p2020_p6 = scmp.ne.s32.totalorder %s2456_s2, %s2019_s21  ;;  %p2023_p7 = scmp.lt.u32.totalorder %s2019_s21, %s2456_s2 }
  0x6c   :  { %p2025_p8 = pnand %p2023_p7, %p2020_p6 }
  0x6e   :  { %2028 = shalt.err (!%p2025_p8)
}
  0x6f   :  { %s2029_s0 = scalar_lea.vmem %s54_s16, 16  ;;  %s2033_s15 = scalar_lea.vmem %s54_s16, 32 }
  0x70   :  { %p2030_p9 = scmp.ne.s32.totalorder %s54_s16, %s2029_s0  ;;  %p2034_p10 = scmp.lt.s32.totalorder %s54_s16, %s54_s16 }
  0x71   :  { %p2035_p11 = scmp.lt.s32.totalorder %s2033_s15, %s2029_s0 }
  0x73   :  { %p2036_p12 = por %p2035_p11, %p2034_p10 }
  0x75   :  { %p2037_p13 = pnand %p2036_p12, %p2030_p9 }
  0x77   :  { %2040 = shalt.err (!%p2037_p13)
}
  0x78   :  { %56 = dma.hbm_to_vmem [thread:$0]  %s2456_s2, 16, %s54_s16, [#allocation7]  }
  0x79   :  { %s2041_s28 = scalar_lea.hbm %s2458_s4, 16 }
  0x7a   :  { %p2042_p0 = scmp.ne.s32.totalorder %s2458_s4, %s2041_s28  ;;  %p2045_p1 = scmp.lt.u32.totalorder %s2041_s28, %s2458_s4 }
  0x7c   :  { %p2047_p2 = pnand %p2045_p1, %p2042_p0 }
  0x7e   :  { %2050 = shalt.err (!%p2047_p2)
}
  0x7f   :  { %s2051_s13 = scalar_lea.vmem %s76_s3, 16  ;;  %s2055_s14 = scalar_lea.vmem %s76_s3, 32 }
  0x80   :  { %p2052_p3 = scmp.ne.s32.totalorder %s76_s3, %s2051_s13  ;;  %p2056_p4 = scmp.lt.s32.totalorder %s76_s3, %s76_s3 }
  0x81   :  { %p2057_p5 = scmp.lt.s32.totalorder %s2055_s14, %s2051_s13 }
  0x83   :  { %p2058_p6 = por %p2057_p5, %p2056_p4 }
  0x85   :  { %p2059_p7 = pnand %p2058_p6, %p2052_p3 }
  0x87   :  { %2062 = shalt.err (!%p2059_p7)
}
  0x88   :  { %78 = dma.hbm_to_vmem [thread:$0]  %s2458_s4, 16, %s76_s3, [#allocation10]  }
  0x89   :  { %s2175_s17 = smov [#allocation14]   ;;  %s2176_s19 = smov [#allocation17]  }
  0x8a   :  { %s97_s20 = sshll.u32 %s2175_s17, 4  ;;  %s119_s21 = sshll.u32 %s2176_s19, 4  ;;  %s98_s20 = int_to_ptr.vmem [resolvable:$true] %s97_s20  ;;  %s120_s21 = int_to_ptr.vmem [resolvable:$true] %s119_s21 }
  0x8b   :  { %s2063_s27 = scalar_lea.hbm %s2460_s6, 16 }
  0x8c   :  { %p2064_p8 = scmp.ne.s32.totalorder %s2460_s6, %s2063_s27  ;;  %p2067_p9 = scmp.lt.u32.totalorder %s2063_s27, %s2460_s6 }
  0x8e   :  { %p2069_p10 = pnand %p2067_p9, %p2064_p8 }
  0x90   :  { %2072 = shalt.err (!%p2069_p10)
}
  0x91   :  { %s2073_s4 = scalar_lea.vmem %s98_s20, 16  ;;  %s2077_s3 = scalar_lea.vmem %s98_s20, 32 }
  0x92   :  { %p2074_p11 = scmp.ne.s32.totalorder %s98_s20, %s2073_s4  ;;  %p2078_p12 = scmp.lt.s32.totalorder %s98_s20, %s98_s20 }
  0x93   :  { %p2079_p13 = scmp.lt.s32.totalorder %s2077_s3, %s2073_s4 }
  0x95   :  { %p2080_p0 = por %p2079_p13, %p2078_p12 }
  0x97   :  { %p2081_p1 = pnand %p2080_p0, %p2074_p11 }
  0x99   :  { %2084 = shalt.err (!%p2081_p1)
}
  0x9a   :  { %100 = dma.hbm_to_vmem [thread:$0]  %s2460_s6, 16, %s98_s20, [#allocation13]  }
  0x9b   :  { %s2085_s5 = scalar_lea.hbm %s2462_s8, 16 }
  0x9c   :  { %p2086_p2 = scmp.ne.s32.totalorder %s2462_s8, %s2085_s5  ;;  %p2089_p3 = scmp.lt.u32.totalorder %s2085_s5, %s2462_s8 }
  0x9e   :  { %p2091_p4 = pnand %p2089_p3, %p2086_p2 }
  0xa0   :  { %2094 = shalt.err (!%p2091_p4)
}
  0xa1   :  { %s2095_s14 = scalar_lea.vmem %s120_s21, 16  ;;  %s2099_s2 = scalar_lea.vmem %s120_s21, 32 }
  0xa2   :  { %p2096_p5 = scmp.ne.s32.totalorder %s120_s21, %s2095_s14  ;;  %p2100_p6 = scmp.lt.s32.totalorder %s120_s21, %s120_s21 }
  0xa3   :  { %p2101_p7 = scmp.lt.s32.totalorder %s2099_s2, %s2095_s14 }
  0xa5   :  { %p2102_p8 = por %p2101_p7, %p2100_p6 }
  0xa7   :  { %p2103_p9 = pnand %p2102_p8, %p2096_p5 }
  0xa9   :  { %2106 = shalt.err (!%p2103_p9)
}
  0xaa   :  { %122 = dma.hbm_to_vmem [thread:$0]  %s2462_s8, 16, %s120_s21, [#allocation16]  }
  0xab   :  { %s2177_s17 = smov [#allocation20]   ;;  %s2107_s7 = scalar_lea.hbm %s2464_s10, 16 }
  0xac   :  { %s141_s20 = sshll.u32 %s2177_s17, 4  ;;  %p2108_p10 = scmp.ne.s32.totalorder %s2464_s10, %s2107_s7  ;;  %s142_s20 = int_to_ptr.vmem [resolvable:$true] %s141_s20 }
  0xad   :  { %p2111_p11 = scmp.lt.u32.totalorder %s2107_s7, %s2464_s10 }
  0xaf   :  { %p2113_p12 = pnand %p2111_p11, %p2108_p10 }
  0xb1   :  { %2116 = shalt.err (!%p2113_p12)
}
  0xb2   :  { %s2117_s1 = scalar_lea.vmem %s142_s20, 16  ;;  %s2121_s8 = scalar_lea.vmem %s142_s20, 32 }
  0xb3   :  { %p2118_p13 = scmp.ne.s32.totalorder %s142_s20, %s2117_s1  ;;  %p2122_p0 = scmp.lt.s32.totalorder %s142_s20, %s142_s20 }
  0xb4   :  { %p2123_p1 = scmp.lt.s32.totalorder %s2121_s8, %s2117_s1 }
  0xb6   :  { %p2124_p2 = por %p2123_p1, %p2122_p0 }
  0xb8   :  { %p2125_p3 = pnand %p2124_p2, %p2118_p13 }
  0xba   :  { %2128 = shalt.err (!%p2125_p3)
}
  0xbb   :  { %144 = dma.hbm_to_vmem [thread:$0]  %s2464_s10, 16, %s142_s20, [#allocation19]  }
  0xbc   :  { %2151 = dma.done.wait [#allocation4], 256  }
  0xbd   :  { %2152 = vsyncadd [#allocation4], 4294967040 }
  0xbe   :  { %2153 = dma.done.wait [#allocation7], 2064  }
  0xbf   :  { %2154 = vsyncadd [#allocation7], 4294965232 }
  0xc0   :  { %2155 = dma.done.wait [#allocation10], 2064  }
  0xc1   :  { %2156 = vsyncadd [#allocation10], 4294965232 }
  0xc2   :  { %2157 = dma.done.wait [#allocation13], 2064  }
  0xc3   :  { %2158 = vsyncadd [#allocation13], 4294965232 }
  0xc4   :  { %2159 = dma.done.wait [#allocation16], 2064  }
  0xc5   :  { %2160 = vsyncadd [#allocation16], 4294965232 }
  0xc6   :  { %2161 = dma.done.wait [#allocation19], 1040  }
  0xc7   :  { %2162 = vsyncadd [#allocation19], 4294966256  ;;  %v2178_v0 = vmov 0   ;;  %v1792_v1 = vld [vmem:[#allocation6 + $0x40] sm:$0xff]   ;;  %v1794_v3 = vld [vmem:[#allocation6 + $0x48] sm:$0xff]   ;;  %vm842_vm1 = vcmask 1044480  }
  0xc8   :  { %179 = vst [vmem:[#allocation2] sm:$0xf] %v2178_v0  ;;  %180 = vst [vmem:[#allocation2 + $0xc] sm:$0xf] %v2178_v0  ;;  %v1793_v2 = vld [vmem:[#allocation6] sm:$0xff]   ;;  %1635 = vmatprep.subr.bf16.mxu0 %v1792_v1  ;;  %v1795_v4 = vld [vmem:[#allocation6 + $0x8] sm:$0xff]  }
  0xc9   :  { %1636 = vmatpush3.bf16.msra.mxu0 %v1793_v2  ;;  %v1796_v5 = vld [vmem:[#allocation6 + $0x50] sm:$0xff]   ;;  %v1798_v7 = vld [vmem:[#allocation6 + $0x58] sm:$0xff]   ;;  %v1800_v9 = vld [vmem:[#allocation6 + $0x60] sm:$0xff]   ;;  %vm229_vm0 = vsmask.f32 4352  ;;  %s2179_s10 = smov [#allocation21]  }
  0xca   :  { %1637 = vmatprep.subr.bf16.mxu0 %v1794_v3  ;;  %v1797_v6 = vld [vmem:[#allocation6 + $0x10] sm:$0xff]   ;;  %v1799_v8 = vld [vmem:[#allocation6 + $0x18] sm:$0xff]   ;;  %v1801_v10 = vld [vmem:[#allocation6 + $0x20] sm:$0xff]   ;;  %s1452_s3 = sshll.u32 %s2179_s10, 4  ;;  %s1453_s3 = int_to_ptr.vmem [resolvable:$true] %s1452_s3 }
  0xcb   :  { %v1802_v11 = vld [vmem:[#allocation6 + $0x68] sm:$0xff]   ;;  %v2411_v12 = vld [vmem:[#allocation3] sm:$0xf]  ;;  %v2413_v13 = vld [vmem:[#allocation3 + $0x4] sm:$0xf]  ;;  %s2129_s18 = scalar_lea.vmem %s1453_s3, 256  ;;  %p2134_p5 = scmp.lt.s32.totalorder %s1453_s3, %s1453_s3 }
  0xcc   :  { %v1803_v14 = vld [vmem:[#allocation6 + $0x28] sm:$0xff]   ;;  %185 = vst [vmem:[#allocation2 + $0x4] sm:$0xf] %v2411_v12  ;;  %186 = vst [vmem:[#allocation2 + $0x8] sm:$0xf] %v2413_v13  ;;  %v1804_v17 = vld [vmem:[#allocation6 + $0x70] sm:$0xff]   ;;  %p2130_p4 = scmp.ne.s32.totalorder %s1453_s3, %s2129_s18  ;;  %p2135_p6 = scmp.lt.s32.totalorder %s2129_s18, %s2129_s18 }
  0xcd   :  { %1638 = vmatpush3.bf16.msra.mxu0 %v1795_v4  ;;  %v2417_v15 = vld [vmem:[#allocation3 + $0x8] sm:$0xf]  ;;  %v2419_v16 = vld [vmem:[#allocation3 + $0xc] sm:$0xf]  ;;  %v1805_v19 = vld [vmem:[#allocation6 + $0x30] sm:$0xff]  }
  0xce   :  { %1639 = vmatprep.subr.bf16.mxu0 %v1796_v5  ;;  %187 = vst [vmem:[#allocation2 + $0x10] sm:$0xf] %v2417_v15  ;;  %188 = vst [vmem:[#allocation2 + $0x14] sm:$0xf] %v2419_v16  ;;  %v1806_v21 = vld [vmem:[#allocation6 + $0x78] sm:$0xff]   ;;  %p2136_p7 = por %p2135_p6, %p2134_p5 }
  0xcf   :  { %v189_v18 = vld [vmem:[#allocation2] sm:$0x8]  ;;  %v192_v20 = vld [vmem:[#allocation2 + $0xc] sm:$0x8] }
  0xd0   :  { %v1807_v24 = vld [vmem:[#allocation6 + $0x38] sm:$0xff]   ;;  %p2137_p8 = pnand %p2136_p7, %p2130_p4 }
  0xd1   :  { %1640 = vmatpush3.bf16.msra.mxu0 %v1797_v6 }
  0xd2   :  { %1641 = vmatprep.subr.bf16.mxu0 %v1798_v7 }
  0xd3   :  { %v190_v22 = vld [vmem:[#allocation2 + $0x4] sm:$0xf]  ;;  %v191_v23 = vld [vmem:[#allocation2 + $0x8] sm:$0xf] }
  0xd4   :  { %v1473_v25 = vcombine.low %v190_v22, %v191_v23  ;;  %v1469_v26 = vcombine.low %v189_v18, %v190_v22  ;;  %v1470_v27 = vcombine.low %v191_v23, %v191_v23  ;;  %v1816_v18 = vld [vmem:[#allocation9 + $0x8] sm:$0xff]   ;;  %v1820_v22 = vld [vmem:[#allocation9 + $0x18] sm:$0xff]   ;;  %v1821_v23 = vld [vmem:[#allocation9 + $0x60] sm:$0xff]  }
  0xd5   :  { %1642 = vmatpush3.bf16.msra.mxu0 %v1799_v8  ;;  %v193_v28 = vld [vmem:[#allocation2 + $0x10] sm:$0xf]  ;;  %v194_v29 = vld [vmem:[#allocation2 + $0x14] sm:$0xf] }
  0xd6   :  { %1643 = vmatprep.subr.bf16.mxu0 %v1800_v9  ;;  %v1474_v30 = vcombine.low %v193_v28, %v194_v29  ;;  %v1471_v31 = vcombine.low %v192_v20, %v193_v28  ;;  %v1472_v32 = vcombine.low %v194_v29, %v194_v29  ;;  %v214_v33 = vshrl.u32 %v1473_v25, 16  ;;  %v1818_v20 = vld [vmem:[#allocation9 + $0x10] sm:$0xff]   ;;  %v1827_v29 = vld [vmem:[#allocation9 + $0x78] sm:$0xff]  }
  0xd7   :  { %v217_v34 = vshll.u32 %v1473_v25, 16  ;;  %v231_v35 = vshrl.u32 %v1469_v26, 16  ;;  %v234_v36 = vshll.u32 %v1469_v26, 16  ;;  %v239_v37 = vshrl.u32 %v1470_v27, 16  ;;  %v1823_v25 = vld [vmem:[#allocation9 + $0x68] sm:$0xff]   ;;  %v1826_v28 = vld [vmem:[#allocation9 + $0x30] sm:$0xff]  }
  0xd8   :  { %v242_v38 = vshll.u32 %v1470_v27, 16  ;;  %v222_v39 = vshrl.u32 %v1474_v30, 16  ;;  %v225_v40 = vshll.u32 %v1474_v30, 16  ;;  %v216_v41 = vrot.slane %v214_v33, 4  ;;  %v1824_v26 = vld [vmem:[#allocation9 + $0x28] sm:$0xff]   ;;  %v1825_v27 = vld [vmem:[#allocation9 + $0x70] sm:$0xff]  }
  0xd9   :  { %1644 = vmatpush3.bf16.msra.mxu0 %v1801_v10  ;;  %v219_v42 = vrot.slane %v217_v34, 5  ;;  %v233_v43 = vrot.slane %v231_v35, 3  ;;  %v236_v44 = vrot.slane %v234_v36, 4  ;;  %v241_v45 = vrot.slane %v239_v37, 3  ;;  %v1828_v30 = vld [vmem:[#allocation9 + $0x38] sm:$0xff]  }
  0xda   :  { %1645 = vmatprep.subr.bf16.mxu0 %v1802_v11  ;;  %v244_v46 = vrot.slane %v242_v38, 4  ;;  %v224_v47 = vrot.slane %v222_v39, 4  ;;  %v227_v48 = vrot.slane %v225_v40, 5  ;;  %v257_v50 = vshrl.u32 %v1471_v31, 16  ;;  %v1813_v11 = vld [vmem:[#allocation9 + $0x40] sm:$0xff]  }
  0xdb   :  { %v220_v49 = vor.u32 %v219_v42, %v216_v41  ;;  %v260_v51 = vshll.u32 %v1471_v31, 16  ;;  %v265_v53 = vshrl.u32 %v1472_v32, 16  ;;  %v268_v54 = vshll.u32 %v1472_v32, 16  ;;  %1663 = vmatprep.subr.bf16.mxu1 %v1813_v11  ;;  %v1835_v31 = vld [vmem:[#allocation12 + $0x40] sm:$0xff]   ;;  %v1475_v34 = vld [vmem:[#allocation8] ss:$0 sm:$0xff] }
  0xdc   :  { %v228_v52 = vor.u32 %v227_v48, %v224_v47  ;;  %v237_v57 = vor.u32 %v236_v44, %v233_v43  ;;  %v245_v58 = vor.u32 %v244_v46, %v241_v45  ;;  %v259_v61 = vrot.slane %v257_v50, 3  ;;  %v1836_v32 = vld [vmem:[#allocation12] sm:$0xff]  }
  0xdd   :  { %1646 = vmatpush3.bf16.msra.mxu0 %v1803_v14  ;;  %v248_v55 = vshrl.u32 %v220_v49, 16  ;;  %v251_v56 = vshll.u32 %v220_v49, 16  ;;  %v262_v62 = vrot.slane %v260_v51, 4  ;;  %v267_v1 = vrot.slane %v265_v53, 3  ;;  %v1814_v14 = vld [vmem:[#allocation9] sm:$0xff]  }
  0xde   :  { %1647 = vmatprep.subr.bf16.mxu0 %v1804_v17  ;;  %v274_v59 = vshrl.u32 %v228_v52, 16  ;;  %v277_v60 = vshll.u32 %v228_v52, 16  ;;  %v270_v2 = vrot.slane %v268_v54, 4  ;;  %v246_v6 = vsel %vm229_vm0, %v237_v57, %v245_v58  ;;  %1664 = vmatpush3.bf16.msra.mxu1 %v1814_v14  ;;  %v1815_v17 = vld [vmem:[#allocation9 + $0x48] sm:$0xff]   ;;  %v494_v54 = vld [vmem:[#allocation2] sm:$0x8] }
  0xdf   :  { %v250_v63 = vrot.slane %v248_v55, 3  ;;  %v253_v0 = vrot.slane %v251_v56, 4  ;;  %v263_v8 = vor.u32 %v262_v62, %v259_v61  ;;  %1665 = vmatprep.subr.bf16.mxu1 %v1815_v17  ;;  %v497_v11 = vld [vmem:[#allocation2 + $0xc] sm:$0x8] }
  0xe0   :  { %v276_v3 = vrot.slane %v274_v59, 3  ;;  %v279_v4 = vrot.slane %v277_v60, 4  ;;  %v271_v9 = vor.u32 %v270_v2, %v267_v1 }
  0xe1   :  { %1648 = vmatpush3.bf16.msra.mxu0 %v1805_v19  ;;  %v254_v5 = vor.u32 %v253_v0, %v250_v63  ;;  %v1817_v19 = vld [vmem:[#allocation9 + $0x50] sm:$0xff]  }
  0xe2   :  { %1649 = vmatprep.subr.bf16.mxu0 %v1806_v21  ;;  %v280_v7 = vor.u32 %v279_v4, %v276_v3  ;;  %v272_v10 = vsel %vm229_vm0, %v263_v8, %v271_v9  ;;  %1666 = vmatpush3.bf16.msra.mxu1 %v1816_v18  ;;  %v1819_v21 = vld [vmem:[#allocation9 + $0x58] sm:$0xff]  }
  0xe3   :  { %453 = vmatprep.mubr.bf16.mxu0 %v254_v5  ;;  %1667 = vmatprep.subr.bf16.mxu1 %v1817_v19 }
  0xe5   :  { %1650 = vmatpush3.bf16.msra.mxu0 %v1807_v24  ;;  %v1822_v24 = vld [vmem:[#allocation9 + $0x20] sm:$0xff]  }
  0xe6   :  { %1668 = vmatpush3.bf16.msra.mxu1 %v1818_v20  ;;  %1691 = vmatprep.subr.bf16.mxu0 %v1835_v31 }
  0xe7   :  { %1669 = vmatprep.subr.bf16.mxu1 %v1819_v21 }
  0xe8   :  { %454 = vmatmul.mubr.bf16.vlgmr.msra.gmra.mrb[0].mxu0 %v246_v6 }
  0xe9   :  { %461 = vmatprep.mubr.bf16.mxu0 %v280_v7  ;;  %1692 = vmatpush3.bf16.msra.mxu0 %v1836_v32 }
  0xea   :  { %1670 = vmatpush3.bf16.msra.mxu1 %v1820_v22 }
  0xeb   :  { %1671 = vmatprep.subr.bf16.mxu1 %v1821_v23 }
  0xee   :  { %1672 = vmatpush3.bf16.msra.mxu1 %v1822_v24 }
  0xef   :  { %1673 = vmatprep.subr.bf16.mxu1 %v1823_v25 }
  0xf0   :  { %462 = vmatmul.mubr.bf16.gmra.mrb[4].mxu0 %v272_v10 }
  0xf2   :  { %1674 = vmatpush3.bf16.msra.mxu1 %v1824_v26 }
  0xf3   :  { %1675 = vmatprep.subr.bf16.mxu1 %v1825_v27 }
  0xf6   :  { %1676 = vmatpush3.bf16.msra.mxu1 %v1826_v28 }
  0xf7   :  { %1677 = vmatprep.subr.bf16.mxu1 %v1827_v29 }
  0xfa   :  { %1678 = vmatpush3.bf16.msra.mxu1 %v1828_v30 }
 0x1bb   :  { %v1651_v33 = vpop.f32.mrb[0].mxu0 }
 0x1bc   :  { %v1652_v35 = vpop.f32.mrb[1].mxu0 }
 0x1bd   :  { %v1653_v36 = vadd.f32 %v1652_v35, %v1651_v33  ;;  %v1654_v37 = vpop.f32.mrb[2].mxu0 }
 0x1be   :  { %v1655_v38 = vpop.f32.mrb[3].mxu0 }
 0x1bf   :  { %v456_v39 = vadd.f32 %v1653_v36, %v1475_v34  ;;  %v1656_v40 = vadd.f32 %v1655_v38, %v1654_v37 }
 0x1c1   :  { %v470_v41 = vmax.f32 %v456_v39, 0.0  ;;  %v459_v42 = vadd.f32 %v1656_v40, %v1475_v34 }
 0x1c3   :  { %v1590_v43 = vpack.c.bf16 %v470_v41, %v470_v41  ;;  %v471_v44 = vmax.f32 %v459_v42, 0.0  ;;  %v1657_v45 = vpop.f32.mrb[4].mxu0 }
 0x1c4   :  { %v1658_v46 = vpop.f32.mrb[5].mxu0 }
 0x1c5   :  { %490 = vst [vmem:[#allocation2 + $0x4] sm:$0xf] %v1590_v43  ;;  %v1591_v47 = vpack.c.bf16 %v471_v44, %v471_v44  ;;  %v1659_v48 = vadd.f32 %v1658_v46, %v1657_v45  ;;  %v1660_v49 = vpop.f32.mrb[6].mxu0 }
 0x1c6   :  { %v1661_v50 = vpop.f32.mrb[7].mxu0 }
 0x1c7   :  { %491 = vst [vmem:[#allocation2 + $0x8] sm:$0xf] %v1591_v47  ;;  %v464_v51 = vadd.f32 %v1659_v48, %v1475_v34  ;;  %v1662_v52 = vadd.f32 %v1661_v50, %v1660_v49 }
 0x1c9   :  { %v467_v53 = vadd.f32 %v1662_v52, %v1475_v34  ;;  %v472_v55 = vmax.f32 %v464_v51, 0.0  ;;  %v1837_v51 = vld [vmem:[#allocation12 + $0x48] sm:$0xff]  }
 0x1ca   :  { %v1838_v52 = vld [vmem:[#allocation12 + $0x8] sm:$0xff]   ;;  %1693 = vmatprep.subr.bf16.mxu0 %v1837_v51 }
 0x1cb   :  { %v473_v56 = vmax.f32 %v467_v53, 0.0  ;;  %1694 = vmatpush3.bf16.msra.mxu0 %v1838_v52  ;;  %v1839_v53 = vld [vmem:[#allocation12 + $0x50] sm:$0xff]  }
 0x1cc   :  { %v495_v57 = vld [vmem:[#allocation2 + $0x4] sm:$0xf]  ;;  %1695 = vmatprep.subr.bf16.mxu0 %v1839_v53  ;;  %v1855_v51 = vld [vmem:[#allocation18 + $0x8] sm:$0xff]   ;;  %v813_v53 = vld [vmem:[#allocation2 + $0xc] sm:$0x8] }
 0x1cd   :  { %v1609_v58 = vpack.c.bf16 %v473_v56, %v472_v55  ;;  %v1496_v59 = vcombine.low %v494_v54, %v495_v57  ;;  %v1840_v54 = vld [vmem:[#allocation12 + $0x10] sm:$0xff]   ;;  %v1841_v55 = vld [vmem:[#allocation12 + $0x58] sm:$0xff]  }
 0x1ce   :  { %v496_v60 = vld [vmem:[#allocation2 + $0x8] sm:$0xf] }
 0x1cf   :  { %1631 = vst [vmem:[#allocation2 + $0x10] sm:$0xff] %v1609_v58   ;;  %v1500_v61 = vcombine.low %v495_v57, %v496_v60  ;;  %v1497_v62 = vcombine.low %v496_v60, %v496_v60  ;;  %v535_v63 = vshrl.u32 %v1496_v59, 16  ;;  %v538_v0 = vshll.u32 %v1496_v59, 16  ;;  %1696 = vmatpush3.bf16.msra.mxu0 %v1840_v54  ;;  %v1842_v56 = vld [vmem:[#allocation12 + $0x18] sm:$0xff]   ;;  %v1843_v57 = vld [vmem:[#allocation12 + $0x60] sm:$0xff]   ;;  %v1845_v59 = vld [vmem:[#allocation12 + $0x68] sm:$0xff]  }
 0x1d0   :  { %1697 = vmatprep.subr.bf16.mxu0 %v1841_v55  ;;  %v1844_v58 = vld [vmem:[#allocation12 + $0x20] sm:$0xff]   ;;  %v1846_v60 = vld [vmem:[#allocation12 + $0x28] sm:$0xff]   ;;  %v1857_v54 = vld [vmem:[#allocation18 + $0x10] sm:$0xff]  }
 0x1d1   :  { %v519_v1 = vshrl.u32 %v1500_v61, 16  ;;  %v522_v2 = vshll.u32 %v1500_v61, 16  ;;  %v543_v3 = vshrl.u32 %v1497_v62, 16  ;;  %v546_v4 = vshll.u32 %v1497_v62, 16  ;;  %v1847_v61 = vld [vmem:[#allocation12 + $0x70] sm:$0xff]  }
 0x1d2   :  { %v537_v7 = vrot.slane %v535_v63, 3  ;;  %v540_v8 = vrot.slane %v538_v0, 4  ;;  %v1848_v62 = vld [vmem:[#allocation12 + $0x30] sm:$0xff]   ;;  %v1849_v63 = vld [vmem:[#allocation12 + $0x78] sm:$0xff]  }
 0x1d3   :  { %v521_v5 = vrot.slane %v519_v1, 4  ;;  %v524_v6 = vrot.slane %v522_v2, 5  ;;  %v545_v9 = vrot.slane %v543_v3, 3  ;;  %v548_v10 = vrot.slane %v546_v4, 4  ;;  %1698 = vmatpush3.bf16.msra.mxu0 %v1842_v56  ;;  %v1850_v0 = vld [vmem:[#allocation12 + $0x38] sm:$0xff]   ;;  %v2427_v1 = vld [vmem:[#allocation18] sm:$0xff]  }
 0x1d4   :  { %v541_v23 = vor.u32 %v540_v8, %v537_v7  ;;  %1699 = vmatprep.subr.bf16.mxu0 %v1843_v57  ;;  %v1865_v2 = vld [vmem:[#allocation15 + $0x40] sm:$0xff]   ;;  %v1867_v4 = vld [vmem:[#allocation15 + $0x48] sm:$0xff]   ;;  %v1502_v7 = vld [vmem:[#allocation11] ss:$0 sm:$0xff] }
 0x1d5   :  { %v525_v14 = vor.u32 %v524_v6, %v521_v5  ;;  %v549_v24 = vor.u32 %v548_v10, %v545_v9  ;;  %v1866_v3 = vld [vmem:[#allocation15] sm:$0xff]   ;;  %1719 = vmatprep.subr.bf16.mxu1 %v1865_v2  ;;  %v1868_v5 = vld [vmem:[#allocation15 + $0x8] sm:$0xff]   ;;  %v1863_v2 = vld [vmem:[#allocation18 + $0x30] sm:$0xff]  }
 0x1d6   :  { %v498_v17 = vld [vmem:[#allocation2 + $0x10] sm:$0xf]  ;;  %v499_v18 = vld [vmem:[#allocation2 + $0x14] sm:$0xf] }
 0x1d7   :  { %v552_v19 = vshrl.u32 %v525_v14, 16  ;;  %v555_v20 = vshll.u32 %v525_v14, 16  ;;  %v1501_v21 = vcombine.low %v498_v17, %v499_v18  ;;  %v1498_v22 = vcombine.low %v497_v11, %v498_v17  ;;  %1700 = vmatpush3.bf16.msra.mxu0 %v1844_v58 }
 0x1d8   :  { %v1499_v25 = vcombine.low %v499_v18, %v499_v18  ;;  %v550_v37 = vsel %vm229_vm0, %v541_v23, %v549_v24  ;;  %1701 = vmatprep.subr.bf16.mxu0 %v1845_v59  ;;  %v778_v17 = vunpack.c.l.bf16 %v2411_v12 }
 0x1d9   :  { %v554_v26 = vrot.slane %v552_v19, 3  ;;  %v557_v27 = vrot.slane %v555_v20, 4  ;;  %v527_v28 = vshrl.u32 %v1501_v21, 16  ;;  %v530_v29 = vshll.u32 %v1501_v21, 16 }
 0x1da   :  { %v561_v30 = vshrl.u32 %v1498_v22, 16  ;;  %v564_v31 = vshll.u32 %v1498_v22, 16  ;;  %v569_v32 = vshrl.u32 %v1499_v25, 16  ;;  %v572_v33 = vshll.u32 %v1499_v25, 16 }
 0x1db   :  { %v558_v34 = vor.u32 %v557_v27, %v554_v26  ;;  %v529_v35 = vrot.slane %v527_v28, 4  ;;  %v532_v36 = vrot.slane %v530_v29, 5  ;;  %1702 = vmatpush3.bf16.msra.mxu0 %v1846_v60  ;;  %v779_v21 = vunpack.c.l.bf16 %v2413_v13 }
 0x1dc   :  { %v563_v38 = vrot.slane %v561_v30, 3  ;;  %v566_v40 = vrot.slane %v564_v31, 4  ;;  %v571_v41 = vrot.slane %v569_v32, 3  ;;  %v574_v42 = vrot.slane %v572_v33, 4  ;;  %1703 = vmatprep.subr.bf16.mxu0 %v1847_v61 }
 0x1dd   :  { %757 = vmatprep.mubr.bf16.mxu1 %v558_v34  ;;  %v533_v39 = vor.u32 %v532_v36, %v529_v35  ;;  %v780_v30 = vunpack.c.l.bf16 %v2417_v15  ;;  %v781_v35 = vunpack.c.l.bf16 %v2419_v16 }
 0x1de   :  { %758 = vmatmul.mubr.bf16.vlgmr.msra.gmra.mrb[0].mxu1 %v550_v37  ;;  %v567_v47 = vor.u32 %v566_v40, %v563_v38  ;;  %v575_v48 = vor.u32 %v574_v42, %v571_v41  ;;  %v810_v42 = vld [vmem:[#allocation2] sm:$0x8] }
 0x1df   :  { %v578_v43 = vshrl.u32 %v533_v39, 16  ;;  %v581_v44 = vshll.u32 %v533_v39, 16  ;;  %1704 = vmatpush3.bf16.msra.mxu0 %v1848_v62  ;;  %1720 = vmatpush3.bf16.msra.mxu1 %v1866_v3  ;;  %v1860_v62 = vld [vmem:[#allocation18 + $0x18] sm:$0xff]  }
 0x1e0   :  { %v576_v50 = vsel %vm229_vm0, %v567_v47, %v575_v48  ;;  %1705 = vmatprep.subr.bf16.mxu0 %v1849_v63  ;;  %1721 = vmatprep.subr.bf16.mxu1 %v1867_v4  ;;  %v1864_v3 = vld [vmem:[#allocation18 + $0x38] sm:$0xff]   ;;  %v1869_v4 = vld [vmem:[#allocation15 + $0x50] sm:$0xff]  }
 0x1e1   :  { %v580_v45 = vrot.slane %v578_v43, 3  ;;  %v583_v46 = vrot.slane %v581_v44, 4 }
 0x1e3   :  { %v584_v49 = vor.u32 %v583_v46, %v580_v45  ;;  %1706 = vmatpush3.bf16.msra.mxu0 %v1850_v0  ;;  %1722 = vmatpush3.bf16.msra.mxu1 %v1868_v5  ;;  %v1861_v0 = vld [vmem:[#allocation18 + $0x20] sm:$0xff]   ;;  %v1870_v5 = vld [vmem:[#allocation15 + $0x10] sm:$0xff]  }
 0x1e4   :  { %1757 = vmatprep.subr.bf16.mxu0 %v2427_v1  ;;  %1723 = vmatprep.subr.bf16.mxu1 %v1869_v4 }
 0x1e5   :  { %765 = vmatprep.mubr.bf16.mxu1 %v584_v49 }
 0x1e6   :  { %766 = vmatmul.mubr.bf16.gmra.mrb[4].mxu1 %v576_v50 }
 0x1e7   :  { %1724 = vmatpush3.bf16.msra.mxu1 %v1870_v5 }
 0x2b1   :  { %v1679_v6 = vpop.f32.mrb[0].mxu1 }
 0x2b2   :  { %v1680_v8 = vpop.f32.mrb[1].mxu1 }
 0x2b3   :  { %v1681_v9 = vadd.f32 %v1680_v8, %v1679_v6  ;;  %v1682_v10 = vpop.f32.mrb[2].mxu1  ;;  %v1871_v6 = vld [vmem:[#allocation15 + $0x58] sm:$0xff]   ;;  %v1873_v8 = vld [vmem:[#allocation15 + $0x60] sm:$0xff]  }
 0x2b4   :  { %v1683_v11 = vpop.f32.mrb[3].mxu1  ;;  %1725 = vmatprep.subr.bf16.mxu1 %v1871_v6 }
 0x2b5   :  { %v760_v14 = vadd.f32 %v1681_v9, %v1502_v7  ;;  %v1684_v18 = vadd.f32 %v1683_v11, %v1682_v10  ;;  %v1874_v9 = vld [vmem:[#allocation15 + $0x20] sm:$0xff]   ;;  %v1875_v10 = vld [vmem:[#allocation15 + $0x68] sm:$0xff]  }
 0x2b6   :  { %v1876_v11 = vld [vmem:[#allocation15 + $0x28] sm:$0xff]  }
 0x2b7   :  { %v774_v19 = vmax.f32 %v760_v14, 0.0  ;;  %v763_v20 = vadd.f32 %v1684_v18, %v1502_v7  ;;  %v1877_v14 = vld [vmem:[#allocation15 + $0x70] sm:$0xff]   ;;  %v1879_v18 = vld [vmem:[#allocation15 + $0x78] sm:$0xff]  }
 0x2b9   :  { %v782_v22 = vadd.f32 %v778_v17, %v774_v19  ;;  %v775_v23 = vmax.f32 %v763_v20, 0.0  ;;  %v1685_v24 = vpop.f32.mrb[4].mxu1  ;;  %v1878_v17 = vld [vmem:[#allocation15 + $0x30] sm:$0xff]   ;;  %v1880_v19 = vld [vmem:[#allocation15 + $0x38] sm:$0xff]  }
 0x2ba   :  { %v1686_v25 = vpop.f32.mrb[5].mxu1 }
 0x2bb   :  { %v786_v26 = vmax.f32 %v782_v22, 0.0  ;;  %v783_v27 = vadd.f32 %v779_v21, %v775_v23  ;;  %v1687_v28 = vadd.f32 %v1686_v25, %v1685_v24  ;;  %v1688_v29 = vpop.f32.mrb[6].mxu1  ;;  %v1531_v21 = vld [vmem:[#allocation14] ss:$0 sm:$0xff] }
 0x2bc   :  { %v1689_v31 = vpop.f32.mrb[7].mxu1 }
 0x2bd   :  { %v1594_v32 = vpack.c.bf16 %v786_v26, %v786_v26  ;;  %v787_v33 = vmax.f32 %v783_v27, 0.0  ;;  %v768_v34 = vadd.f32 %v1687_v28, %v1502_v7  ;;  %v1690_v12 = vadd.f32 %v1689_v31, %v1688_v29 }
 0x2bf   :  { %806 = vst [vmem:[#allocation2 + $0x4] sm:$0xf] %v1594_v32  ;;  %v1595_v36 = vpack.c.bf16 %v787_v33, %v787_v33  ;;  %v776_v13 = vmax.f32 %v768_v34, 0.0  ;;  %v771_v37 = vadd.f32 %v1690_v12, %v1502_v7  ;;  %v790_v38 = vpack.c.bf16 %v787_v33, %v786_v26  ;;  %v1872_v7 = vld [vmem:[#allocation15 + $0x18] sm:$0xff]  }
 0x2c0   :  { %1726 = vmatpush3.bf16.msra.mxu1 %v1872_v7 }
 0x2c1   :  { %807 = vst [vmem:[#allocation2 + $0x8] sm:$0xf] %v1595_v36  ;;  %v784_v39 = vadd.f32 %v780_v30, %v776_v13  ;;  %v777_v40 = vmax.f32 %v771_v37, 0.0  ;;  %1727 = vmatprep.subr.bf16.mxu1 %v1873_v8 }
 0x2c3   :  { %v785_v41 = vadd.f32 %v781_v35, %v777_v40  ;;  %v788_v43 = vmax.f32 %v784_v39, 0.0  ;;  %v1065_v39 = vld [vmem:[#allocation2] sm:$0x8] }
 0x2c4   :  { %1728 = vmatpush3.bf16.msra.mxu1 %v1874_v9 }
 0x2c5   :  { %v789_v44 = vmax.f32 %v785_v41, 0.0  ;;  %1729 = vmatprep.subr.bf16.mxu1 %v1875_v10 }
 0x2c6   :  { %v811_v15 = vld [vmem:[#allocation2 + $0x4] sm:$0xf] }
 0x2c7   :  { %v791_v45 = vpack.c.bf16 %v789_v44, %v788_v43  ;;  %v1523_v46 = vcombine.low %v810_v42, %v811_v15 }
 0x2c8   :  { %v816_v47 = vld [vmem:[#allocation2 + $0x8] sm:$0xf]  ;;  %1730 = vmatpush3.bf16.msra.mxu1 %v1876_v11 }
 0x2c9   :  { %1632 = vst [vmem:[#allocation2 + $0x10] sm:$0xff] %v791_v45   ;;  %v1527_v48 = vcombine.low %v811_v15, %v816_v47  ;;  %v843_v49 = vrot.slane %v1523_v46, 3  ;;  %v1854_v16 = vld [vmem:[#allocation2 + $0x8] ss:$0 sps:$4 sm:$0x77]   ;;  %1731 = vmatprep.subr.bf16.mxu1 %v1877_v14 }
 0x2ca   :  { %v844_v50 = vrot.slane %v1854_v16, 3  ;;  %v1068_v16 = vld [vmem:[#allocation2 + $0xc] sm:$0x8] }
 0x2cb   :  { %1024 = vmatprep.mubr.bf16.mxu0 %v1527_v48 }
 0x2cc   :  { %v845_v52 = vsel %vm842_vm1, %v843_v49, %v844_v50  ;;  %1732 = vmatpush3.bf16.msra.mxu1 %v1878_v17 }
 0x2cd   :  { %1025 = vmatmul.mubr.bf16.vlgmr.msra.gmra.mrb[8].mxu0 %v845_v52  ;;  %1733 = vmatprep.subr.bf16.mxu1 %v1879_v18 }
 0x2ce   :  { %1758 = vmatpush3.bf16.msra.mxu0 %v2427_v1  ;;  %v1862_v1 = vld [vmem:[#allocation18 + $0x28] sm:$0xff]  }
 0x2cf   :  { %1759 = vmatprep.subr.bf16.mxu0 %v1855_v51 }
 0x2d0   :  { %v814_v55 = vld [vmem:[#allocation2 + $0x10] sm:$0xf]  ;;  %v817_v56 = vld [vmem:[#allocation2 + $0x14] sm:$0xf]  ;;  %1734 = vmatpush3.bf16.msra.mxu1 %v1880_v19 }
 0x2d1   :  { %v1528_v57 = vcombine.low %v814_v55, %v817_v56  ;;  %v1525_v58 = vcombine.low %v813_v53, %v814_v55  ;;  %v1859_v59 = vld [vmem:[#allocation2 + $0x14] ss:$0 sps:$4 sm:$0x77]  }
 0x2d2   :  { %1760 = vmatpush3.bf16.msra.mxu0 %v1855_v51  ;;  %v849_v61 = vrot.slane %v1859_v59, 3 }
 0x2d3   :  { %1032 = vmatprep.mubr.bf16.mxu0 %v1528_v57  ;;  %v848_v60 = vrot.slane %v1525_v58, 3  ;;  %1761 = vmatprep.subr.bf16.mxu0 %v1857_v54 }
 0x2d5   :  { %v850_v63 = vsel %vm842_vm1, %v848_v60, %v849_v61 }
 0x2d6   :  { %1033 = vmatmul.mubr.bf16.gmra.mrb[12].mxu0 %v850_v63  ;;  %v1560_v63 = vld [vmem:[#allocation17] ss:$0 sm:$0xff] }
 0x2d7   :  { %1762 = vmatpush3.bf16.msra.mxu0 %v1857_v54  ;;  %1773 = vmatprep.mubr.bf16.mxu0 %v790_v38 }
 0x2d8   :  { %1763 = vmatprep.subr.bf16.mxu0 %v1860_v62 }
 0x2db   :  { %1764 = vmatpush3.bf16.msra.mxu0 %v1860_v62 }
 0x2dc   :  { %1765 = vmatprep.subr.bf16.mxu0 %v1861_v0 }
 0x2df   :  { %1766 = vmatpush3.bf16.msra.mxu0 %v1861_v0 }
 0x2e0   :  { %1767 = vmatprep.subr.bf16.mxu0 %v1862_v1 }
 0x2e3   :  { %1768 = vmatpush3.bf16.msra.mxu0 %v1862_v1 }
 0x2e4   :  { %1769 = vmatprep.subr.bf16.mxu0 %v1863_v2 }
 0x2e7   :  { %1770 = vmatpush3.bf16.msra.mxu0 %v1863_v2 }
 0x2e8   :  { %1771 = vmatprep.subr.bf16.mxu0 %v1864_v3 }
 0x2eb   :  { %1772 = vmatpush3.bf16.msra.mxu0 %v1864_v3  ;;  %v1577_v3 = vld [vmem:[#allocation20] ss:$0 sm:$0xff] }
 0x2ee   :  { %1774 = vmatmul.mubr.bf16.vlgmr.msra.gmra.mrb[16].mxu0 %v791_v45 }
 0x3a0   :  { %v1707_v20 = vpop.f32.mrb[8].mxu0 }
 0x3a1   :  { %v1708_v22 = vpop.f32.mrb[9].mxu0 }
 0x3a2   :  { %v1709_v23 = vadd.f32 %v1708_v22, %v1707_v20  ;;  %v1710_v24 = vpop.f32.mrb[10].mxu0 }
 0x3a3   :  { %v1711_v25 = vpop.f32.mrb[11].mxu0 }
 0x3a4   :  { %v1027_v26 = vadd.f32 %v1709_v23, %v1531_v21  ;;  %v1712_v27 = vadd.f32 %v1711_v25, %v1710_v24 }
 0x3a6   :  { %v1041_v28 = vmax.f32 %v1027_v26, 0.0  ;;  %v1030_v29 = vadd.f32 %v1712_v27, %v1531_v21 }
 0x3a8   :  { %v1598_v30 = vpack.c.bf16 %v1041_v28, %v1041_v28  ;;  %v1042_v31 = vmax.f32 %v1030_v29, 0.0 }
 0x3a9   :  { %v1713_v32 = vpop.f32.mrb[12].mxu0 }
 0x3aa   :  { %v1714_v33 = vpop.f32.mrb[13].mxu0  ;;  %1061 = vst [vmem:[#allocation2 + $0x4] sm:$0xf] %v1598_v30  ;;  %v1599_v34 = vpack.c.bf16 %v1042_v31, %v1042_v31 }
 0x3ab   :  { %v1715_v12 = vadd.f32 %v1714_v33, %v1713_v32  ;;  %v1716_v35 = vpop.f32.mrb[14].mxu0 }
 0x3ac   :  { %v1717_v36 = vpop.f32.mrb[15].mxu0  ;;  %1062 = vst [vmem:[#allocation2 + $0x8] sm:$0xf] %v1599_v34 }
 0x3ad   :  { %v1035_v13 = vadd.f32 %v1715_v12, %v1531_v21  ;;  %v1718_v37 = vadd.f32 %v1717_v36, %v1716_v35 }
 0x3af   :  { %v1038_v38 = vadd.f32 %v1718_v37, %v1531_v21  ;;  %v1043_v40 = vmax.f32 %v1035_v13, 0.0 }
 0x3b1   :  { %v1044_v41 = vmax.f32 %v1038_v38, 0.0  ;;  %v1066_v42 = vld [vmem:[#allocation2 + $0x4] sm:$0xf] }
 0x3b2   :  { %v1552_v44 = vcombine.low %v1065_v39, %v1066_v42 }
 0x3b3   :  { %v1619_v43 = vpack.c.bf16 %v1044_v41, %v1043_v40  ;;  %v1071_v15 = vld [vmem:[#allocation2 + $0x8] sm:$0xf] }
 0x3b4   :  { %v1556_v45 = vcombine.low %v1066_v42, %v1071_v15  ;;  %v1097_v46 = vrot.slane %v1552_v44, 3  ;;  %v1883_v47 = vld [vmem:[#allocation2 + $0x8] ss:$0 sps:$4 sm:$0x77]  }
 0x3b5   :  { %1633 = vst [vmem:[#allocation2 + $0x10] sm:$0xff] %v1619_v43   ;;  %v1098_v48 = vrot.slane %v1883_v47, 3 }
 0x3b6   :  { %1278 = vmatprep.mubr.bf16.mxu1 %v1556_v45 }
 0x3b7   :  { %v1099_v49 = vsel %vm842_vm1, %v1097_v46, %v1098_v48 }
 0x3b8   :  { %1279 = vmatmul.mubr.bf16.vlgmr.msra.gmra.mrb[8].mxu1 %v1099_v49 }
 0x3bc   :  { %v1069_v50 = vld [vmem:[#allocation2 + $0x10] sm:$0xf]  ;;  %v1072_v51 = vld [vmem:[#allocation2 + $0x14] sm:$0xf] }
 0x3bd   :  { %v1554_v52 = vcombine.low %v1068_v16, %v1069_v50  ;;  %v1557_v53 = vcombine.low %v1069_v50, %v1072_v51  ;;  %v1886_v54 = vld [vmem:[#allocation2 + $0x14] ss:$0 sps:$4 sm:$0x77]  }
 0x3be   :  { %v1103_v56 = vrot.slane %v1886_v54, 3 }
 0x3bf   :  { %1286 = vmatprep.mubr.bf16.mxu1 %v1557_v53  ;;  %v1102_v55 = vrot.slane %v1554_v52, 3 }
 0x3c1   :  { %v1775_v57 = vpop.f32.mrb[16].mxu0  ;;  %v1104_v58 = vsel %vm842_vm1, %v1102_v55, %v1103_v56 }
 0x3c2   :  { %v1404_v59 = vpop.f32.mrb[17].mxu0  ;;  %1287 = vmatmul.mubr.bf16.gmra.mrb[12].mxu1 %v1104_v58  ;;  %v1413_v27 = vadd.f32 %v1775_v57, %v1577_v3 }
 0x3c3   :  { %v1776_v60 = vpop.f32.mrb[18].mxu0  ;;  %v1405_v7 = vadd.f32 %v1577_v3, %v1404_v59 }
 0x3c4   :  { %v1407_v61 = vpop.f32.mrb[19].mxu0  ;;  %v1416_v31 = vadd.f32 %v1776_v60, %v1577_v3 }
 0x3c5   :  { %v1408_v10 = vadd.f32 %v1577_v3, %v1407_v61 }
 0x48b   :  { %v1735_v62 = vpop.f32.mrb[8].mxu1 }
 0x48c   :  { %v1736_v0 = vpop.f32.mrb[9].mxu1 }
 0x48d   :  { %v1737_v1 = vadd.f32 %v1736_v0, %v1735_v62  ;;  %v1738_v2 = vpop.f32.mrb[10].mxu1 }
 0x48e   :  { %v1739_v4 = vpop.f32.mrb[11].mxu1 }
 0x48f   :  { %v1281_v5 = vadd.f32 %v1737_v1, %v1560_v63  ;;  %v1740_v6 = vadd.f32 %v1739_v4, %v1738_v2 }
 0x491   :  { %v1295_v8 = vmax.f32 %v1281_v5, 0.0  ;;  %v1284_v9 = vadd.f32 %v1740_v6, %v1560_v63 }
 0x493   :  { %v1419_v11 = vadd.f32 %v1405_v7, %v1295_v8  ;;  %v1296_v14 = vmax.f32 %v1284_v9, 0.0 }
 0x495   :  { %v1741_v17 = vpop.f32.mrb[12].mxu1  ;;  %v1420_v19 = vadd.f32 %v1408_v10, %v1296_v14  ;;  %v1423_v23 = vmax.f32 %v1419_v11, 0.0 }
 0x496   :  { %v1742_v18 = vpop.f32.mrb[13].mxu1 }
 0x497   :  { %v1743_v20 = vadd.f32 %v1742_v18, %v1741_v17  ;;  %v1744_v21 = vpop.f32.mrb[14].mxu1  ;;  %v1424_v24 = vmax.f32 %v1420_v19, 0.0 }
 0x498   :  { %v1745_v22 = vpop.f32.mrb[15].mxu1 }
 0x499   :  { %v1289_v25 = vadd.f32 %v1743_v20, %v1560_v63  ;;  %v1746_v26 = vadd.f32 %v1745_v22, %v1744_v21  ;;  %v1624_v30 = vpack.c.bf16 %v1424_v24, %v1423_v23 }
 0x49b   :  { %v1297_v28 = vmax.f32 %v1289_v25, 0.0  ;;  %v1292_v29 = vadd.f32 %v1746_v26, %v1560_v63  ;;  %1625 = vst [vmem:[#allocation21] sm:$0xff] %v1624_v30  }
 0x49d   :  { %v1421_v32 = vadd.f32 %v1413_v27, %v1297_v28  ;;  %v1298_v33 = vmax.f32 %v1292_v29, 0.0 }
 0x49f   :  { %v1422_v34 = vadd.f32 %v1416_v31, %v1298_v33  ;;  %v1425_v12 = vmax.f32 %v1421_v32, 0.0 }
 0x4a1   :  { %v1426_v35 = vmax.f32 %v1422_v34, 0.0 }
 0x4a3   :  { %v1629_v36 = vpack.c.bf16 %v1426_v35, %v1425_v12 }
 0x4a5   :  { %1634 = vst [vmem:[#allocation21 + $0x8] sm:$0xff] %v1629_v36  }
 0x4a6   :  { %2140 = shalt.err (!%p2137_p8)
}
 0x4a7   :  { %s2141_s28 = scalar_lea.hbm %s2465_s11, 256 }
 0x4a8   :  { %p2142_p9 = scmp.ne.s32.totalorder %s2465_s11, %s2141_s28  ;;  %p2145_p10 = scmp.lt.u32.totalorder %s2141_s28, %s2465_s11 }
 0x4aa   :  { %p2147_p11 = pnand %p2145_p10, %p2142_p9 }
 0x4ac   :  { %2150 = shalt.err (!%p2147_p11)
}
 0x4ad   :  { %1458 = dma.vmem_to_hbm [thread:$0]  %s1453_s3, 256, %s2465_s11, [#allocation5], %s2167_s29, %s2167_s29, %s2168_s30  }
 0x4ae   :  { %2163 = dma.done.wait [#allocation5], 256  }
 0x4af   :  { %2164 = vsyncadd [#allocation5], 4294967040 }
 0x4b0   :  { %1462 = vsyncpa [#allocation4], 1 }
 0x4b1   :  { %1463 = vsyncpa [#allocation7], 1 }
 0x4b2   :  { %1464 = vsyncpa [#allocation10], 1 }
 0x4b3   :  { %1465 = vsyncpa [#allocation13], 1 }
 0x4b4   :  { %1466 = vsyncpa [#allocation16], 1 }
 0x4b5   :  { %1467 = vsyncpa [#allocation19], 1 }
 0x4b6   :  { %1468 = vsyncpa [#allocation5], 1 }

</bundles_post_ra>
